<compile_context>
chip_gen: v7x
topology: tpu7x:2x2x1
jax: 0.10.0
libtpu: 0.0.40
codegen_flags: <defaults>
</compile_context>

<pallas_src>
import jax
import jax.numpy as jnp
import numpy as np
from jax.experimental import pallas as pl
from jax.experimental.pallas import tpu as pltpu

BN_EPS = 1e-5


def _round_up(x, m):
    return (x + m - 1) // m * m


# ---------------------------------------------------------------------------
# Pallas kernel: one (tm, K) x (K, N) GEMM tile, bf16 in, f32 accumulate/out.
# ---------------------------------------------------------------------------
def _matmul_kernel(a_ref, w_ref, o_ref):
    o_ref[...] = jnp.dot(
        a_ref[...], w_ref[...], preferred_element_type=jnp.float32
    ).astype(o_ref.dtype)


def _choose_tm(M, max_tm=2048):
    """Large M tiles (amortize ~0.35us/step), but keep >=2 grid steps when
    possible so the ("parallel",) axis can shard across v7x's 2 TensorCores."""
    Mp8 = _round_up(M, 8)
    if Mp8 <= 8:
        return Mp8
    half = _round_up((Mp8 + 1) // 2, 8)
    return min(max_tm, half)


def matmul_pallas(a_bf16, w_bf16):
    """a: [M, K] bf16, w: [K, N] bf16 -> [M, N] f32.  K, N are NOT padded
    (full-array blocks); only M is padded up to a tile multiple."""
    M, K = a_bf16.shape
    K2, N = w_bf16.shape
    assert K == K2
    tm = _choose_tm(M)
    Mp = _round_up(M, tm)
    if Mp != M:
        a_bf16 = jnp.pad(a_bf16, ((0, Mp - M), (0, 0)))

    out = pl.pallas_call(
        _matmul_kernel,
        out_shape=jax.ShapeDtypeStruct((Mp, N), jnp.float32),
        grid_spec=pltpu.PrefetchScalarGridSpec(
            num_scalar_prefetch=0,
            grid=(Mp // tm,),
            in_specs=[
                pl.BlockSpec((tm, K), lambda i: (i, 0)),   # activations tile
                pl.BlockSpec((K, N), lambda i: (0, 0)),    # whole weight (tiny)
            ],
            out_specs=pl.BlockSpec((tm, N), lambda i: (i, 0)),
        ),
        compiler_params=pltpu.CompilerParams(
            dimension_semantics=("parallel",),
            # Headroom for larger batch configs; actual use here is ~4 MiB and
            # 48 MiB stays under v7x's 64 MiB physical VMEM.
            vmem_limit_bytes=48 * 1024 * 1024,
        ),
    )(a_bf16, w_bf16)
    return out[:M] if Mp != M else out


# ---------------------------------------------------------------------------
# col2im overlap-add (XLA glue, dense ops only — no strided scatter).
# y: [B, H, W, k, k, C] GEMM output; returns [B, OH, OW, C].
# ---------------------------------------------------------------------------
def _col2im_stride1(y, pad):
    B, H, W, k, _, C = y.shape
    FH, FW = H + k - 1, W + k - 1
    full = jnp.zeros((B, FH, FW, C), y.dtype)
    for kh in range(k):
        for kw in range(k):
            full = full + jnp.pad(
                y[:, :, :, kh, kw, :],
                ((0, 0), (kh, k - 1 - kh), (kw, k - 1 - kw), (0, 0)),
            )
    OH, OW = FH - 2 * pad, FW - 2 * pad
    return full[:, pad:pad + OH, pad:pad + OW, :]


def _pad_axis(a, axis, lohi):
    cfg = [(0, 0)] * a.ndim
    cfg[axis] = lohi
    return jnp.pad(a, cfg)


def _col2im_stride2(y, pad):
    """stride=2, k=4 specialization via parity interleaving: per output-row
    parity the contributing taps are a shifted add; even/odd planes are then
    interleaved with a stack+reshape.  All dense — no scatter."""
    B, H, W, k, _, C = y.shape
    assert k == 4
    # rows: oh = 2*h + kh
    e = _pad_axis(y[:, :, :, 0, :, :], 1, (0, 1)) + _pad_axis(y[:, :, :, 2, :, :], 1, (1, 0))
    o = _pad_axis(y[:, :, :, 1, :, :], 1, (0, 1)) + _pad_axis(y[:, :, :, 3, :, :], 1, (1, 0))
    z = jnp.stack([e, o], axis=2).reshape(B, 2 * (H + 1), W, k, C)
    # cols: ow = 2*w + kw
    ec = _pad_axis(z[:, :, :, 0, :], 2, (0, 1)) + _pad_axis(z[:, :, :, 2, :], 2, (1, 0))
    oc = _pad_axis(z[:, :, :, 1, :], 2, (0, 1)) + _pad_axis(z[:, :, :, 3, :], 2, (1, 0))
    full = jnp.stack([ec, oc], axis=3).reshape(B, 2 * (H + 1), 2 * (W + 1), C)
    OH = 2 * H + 2 - 2 * pad
    OW = 2 * W + 2 - 2 * pad
    return full[:, pad:pad + OH, pad:pad + OW, :]


# ---------------------------------------------------------------------------
# One deconv layer: Pallas GEMM + col2im + (bias) + (sigmoid on last layer).
# ---------------------------------------------------------------------------
def deconv_layer(x_nhwc, w4, bias, stride, pad, is_last):
    B, H, W, Cin = x_nhwc.shape
    _, k, _, Cout = w4.shape
    a = x_nhwc.reshape(B * H * W, Cin).astype(jnp.bfloat16)
    wmat = w4.reshape(Cin, k * k * Cout)                 # already bf16, BN-scaled
    y = matmul_pallas(a, wmat)                           # [B*H*W, k*k*Cout] f32
    y = y.reshape(B, H, W, k, k, Cout)
    if stride == 1:
        out = _col2im_stride1(y, pad)
    elif stride == 2:
        out = _col2im_stride2(y, pad)
    else:
        raise NotImplementedError("only stride 1/2 used by this Decoder")
    if bias is not None:
        out = out + bias                                 # BatchNorm bias
    if is_last:
        out = jax.nn.sigmoid(out)
    # else: nn.LeakyReLU(True) -> negative_slope == 1.0 -> identity (no-op).
    return out


# ---------------------------------------------------------------------------
# Parameters.
# ---------------------------------------------------------------------------
def init_decoder_params(key, in_channels):
    """Raw PyTorch-layout params: ConvTranspose2d weight [Cin, Cout, 4, 4] and
    BatchNorm2d (gamma, beta, running mean/var) for all but the last layer."""
    params = []
    n_layers = len(in_channels) - 1
    for li in range(n_layers):
        cin, cout = in_channels[li], in_channels[li + 1]
        key, kw, kg, kb, km, kv = jax.random.split(key, 6)
        w = jax.random.normal(kw, (cin, cout, 4, 4), jnp.float32) * 0.1
        if li < n_layers - 1:
            gamma = 1.0 + 0.1 * jax.random.normal(kg, (cout,), jnp.float32)
            beta = 0.1 * jax.random.normal(kb, (cout,), jnp.float32)
            mean = 0.1 * jax.random.normal(km, (cout,), jnp.float32)
            var = 1.0 + 0.1 * jnp.abs(jax.random.normal(kv, (cout,), jnp.float32))
            params.append(dict(w=w, gamma=gamma, beta=beta, mean=mean, var=var))
        else:
            params.append(dict(w=w))
    return params


def prepare_decoder_params(raw_params):
    """One-time preprocessing (hoisted out of the forward path): reorder the
    ConvTranspose weight to [Cin, k, k, Cout], fold the inference-mode BN scale
    into it, cast to bf16; keep the per-channel bias separate (added post
    col2im)."""
    wmats, biases = [], []
    n_layers = len(raw_params)
    for li, p in enumerate(raw_params):
        w = jnp.transpose(p["w"], (0, 2, 3, 1))          # [Cin, k, k, Cout]
        if li < n_layers - 1:
            scale = p["gamma"] / jnp.sqrt(p["var"] + BN_EPS)
            bias = p["beta"] - p["mean"] * scale
            w = w * scale[None, None, None, :]
        else:
            bias = None
        wmats.append(w.astype(jnp.bfloat16))
        biases.append(bias)
    return wmats, biases


# ---------------------------------------------------------------------------
# Decoder forward (SetBlockWrapper semantics: fold s into the batch).
# x: [n, c, s, h, w]  ->  [n, c_out, s, OH, OW]
# ---------------------------------------------------------------------------
def decoder_forward(x, wmats, biases):
    n, c, s, h, w = x.shape
    y = jnp.transpose(x, (0, 2, 3, 4, 1)).reshape(n * s, h, w, c)   # NHWC frames
    n_layers = len(wmats)
    for li in range(n_layers):
        stride = 1 if li == 0 else 2
        pad = 0 if li == 0 else 1
        y = deconv_layer(y, wmats[li], biases[li], stride, pad,
                         is_last=(li == n_layers - 1))
    B, OH, OW, Cout = y.shape
    y = y.reshape(n, s, OH, OW, Cout)
    return jnp.transpose(y, (0, 4, 1, 2, 3))


# ---------------------------------------------------------------------------
# Pure-JAX f32 reference (direct scatter-add conv_transpose) for validation.
# ---------------------------------------------------------------------------
def ref_conv_transpose(x_nchw, w_t, stride, pad):
    B, Cin, H, W = x_nchw.shape
    Cout, k = w_t.shape[1], w_t.shape[2]
    full = jnp.zeros((B, Cout, (H - 1) * stride + k, (W - 1) * stride + k), jnp.float32)
    for kh in range(k):
        for kw in range(k):
            contrib = jnp.einsum("bihw,io->bohw", x_nchw, w_t[:, :, kh, kw])
            full = full.at[:, :, kh:kh + (H - 1) * stride + 1:stride,
                           kw:kw + (W - 1) * stride + 1:stride].add(contrib)
    OH = (H - 1) * stride + k - 2 * pad
    OW = (W - 1) * stride + k - 2 * pad
    return full[:, :, pad:pad + OH, pad:pad + OW]


def ref_decoder(x, params):
    n, c, s, h, w = x.shape
    y = jnp.transpose(x, (0, 2, 1, 3, 4)).reshape(n * s, c, h, w)
    n_layers = len(params)
    strides = [1] + [2] * (n_layers - 1)
    pads = [0] + [1] * (n_layers - 1)
    for li, p in enumerate(params):
        y = ref_conv_transpose(y, p["w"], strides[li], pads[li])
        if li < n_layers - 1:
            sc = p["gamma"] / jnp.sqrt(p["var"] + BN_EPS)
            bi = p["beta"] - p["mean"] * sc
            y = y * sc[None, :, None, None] + bi[None, :, None, None]
            # LeakyReLU(True): negative_slope == 1.0 -> identity.
        else:
            y = jax.nn.sigmoid(y)
    B, Cout, OH, OW = y.shape
    y = y.reshape(n, s, Cout, OH, OW)
    return jnp.transpose(y, (0, 2, 1, 3, 4))


if __name__ == "__main__":
    key = jax.random.PRNGKey(0)
    # model_cfg['Decoder']['in_channels'] (small synthetic config)
    in_channels = [16, 16, 8, 8, 4, 1]
    kx, kp = jax.random.split(key)
    # x: [n, c, s, h, w] latent set tensor (1x1 spatial -> 4 -> 8 -> 16 -> 32 -> 64)
    x = jax.random.normal(kx, (2, in_channels[0], 2, 1, 1), jnp.float32)
    raw_params = init_decoder_params(kp, in_channels)
    wmats, biases = prepare_decoder_params(raw_params)   # hoisted weight prep

    fwd = jax.jit(decoder_forward)
    out = jax.block_until_ready(fwd(x, wmats, biases))
    assert out.shape == (2, 1, 2, 64, 64), out.shape

    ref = jax.block_until_ready(ref_decoder(x, raw_params))
    # bf16 operands (f32 accumulation) vs. f32 reference -> relaxed tolerance.
    np.testing.assert_allclose(np.asarray(out), np.asarray(ref), rtol=5e-2, atol=2e-2)
    print("KERNEL_OK")
</pallas_src>

<mosaic_0001>
module attributes {stable_mosaic.version = 11 : i64} {
  func.func @_matmul_kernel(%arg0: i32, %arg1: memref<8x16xbf16, #tpu.memory_space<vmem>>, %arg2: memref<16x256xbf16, #tpu.memory_space<vmem>>, %arg3: memref<8x256xf32, #tpu.memory_space<vmem>>) attributes {dimension_semantics = [#tpu.dimension_semantics<parallel>], iteration_bounds = array<i64: 1>, scalar_prefetch = 0 : i64, scratch_operands = 0 : i64, tpu.core_type = #tpu.core_type<tc>, window_params = [{transform_indices = @transform_0, window_bounds = array<i64: 8, 16>}, {pipeline_mode = #tpu.pipeline_mode<synchronous>, transform_indices = @transform_1, window_bounds = array<i64: 16, 256>}, {transform_indices = @transform_2, window_bounds = array<i64: 8, 256>}]} {
    %c0 = arith.constant 0 : index
    %c0_0 = arith.constant 0 : index
    %0 = vector.load %arg1[%c0, %c0_0] : memref<8x16xbf16, #tpu.memory_space<vmem>>, vector<8x16xbf16>
    %c0_1 = arith.constant 0 : index
    %c0_2 = arith.constant 0 : index
    %1 = vector.load %arg2[%c0_1, %c0_2] : memref<16x256xbf16, #tpu.memory_space<vmem>>, vector<16x256xbf16>
    %cst = arith.constant dense<0.000000e+00> : vector<8x256xf32>
    %2 = tpu.matmul %0, %1, %cst {dimension_numbers = #tpu.dot_dimension_numbers<[1], [0], [0], [1], [0, 0, 1, 1], [], []>} : vector<8x16xbf16>, vector<16x256xbf16>, vector<8x256xf32> -> vector<8x256xf32>
    %c0_3 = arith.constant 0 : index
    %c0_4 = arith.constant 0 : index
    %3 = vector.load %arg3[%c0_3, %c0_4] : memref<8x256xf32, #tpu.memory_space<vmem>>, vector<8x256xf32>
    tpu.vector_store %arg3[%c0_3, %c0_4], %2 {strides = array<i32>} : memref<8x256xf32, #tpu.memory_space<vmem>>, vector<8x256xf32>,
    return
  }
  func.func @transform_0(%arg0: i32) -> (i32, i32) {
    %c0_i32 = arith.constant 0 : i32
    %c0_i32_0 = arith.constant 0 : i32
    return %arg0, %c0_i32 : i32, i32
  }
  func.func @transform_1(%arg0: i32) -> (i32, i32) {
    %c0_i32 = arith.constant 0 : i32
    %c0_i32_0 = arith.constant 0 : i32
    %c0_i32_1 = arith.constant 0 : i32
    return %c0_i32, %c0_i32_0 : i32, i32
  }
  func.func @transform_2(%arg0: i32) -> (i32, i32) {
    %c0_i32 = arith.constant 0 : i32
    %c0_i32_0 = arith.constant 0 : i32
    return %arg0, %c0_i32 : i32, i32
  }
}

module attributes {stable_mosaic.version = 11 : i64} {
  func.func @_matmul_kernel(%arg0: i32, %arg1: memref<32x16xbf16, #tpu.memory_space<vmem>>, %arg2: memref<16x128xbf16, #tpu.memory_space<vmem>>, %arg3: memref<32x128xf32, #tpu.memory_space<vmem>>) attributes {dimension_semantics = [#tpu.dimension_semantics<parallel>], iteration_bounds = array<i64: 2>, scalar_prefetch = 0 : i64, scratch_operands = 0 : i64, tpu.core_type = #tpu.core_type<tc>, window_params = [{transform_indices = @transform_0, window_bounds = array<i64: 32, 16>}, {pipeline_mode = #tpu.pipeline_mode<synchronous>, transform_indices = @transform_1, window_bounds = array<i64: 16, 128>}, {transform_indices = @transform_2, window_bounds = array<i64: 32, 128>}]} {
    %c0 = arith.constant 0 : index
    %c0_0 = arith.constant 0 : index
    %0 = vector.load %arg1[%c0, %c0_0] : memref<32x16xbf16, #tpu.memory_space<vmem>>, vector<32x16xbf16>
    %c0_1 = arith.constant 0 : index
    %c0_2 = arith.constant 0 : index
    %1 = vector.load %arg2[%c0_1, %c0_2] : memref<16x128xbf16, #tpu.memory_space<vmem>>, vector<16x128xbf16>
    %cst = arith.constant dense<0.000000e+00> : vector<32x128xf32>
    %2 = tpu.matmul %0, %1, %cst {dimension_numbers = #tpu.dot_dimension_numbers<[1], [0], [0], [1], [0, 0, 1, 1], [], []>} : vector<32x16xbf16>, vector<16x128xbf16>, vector<32x128xf32> -> vector<32x128xf32>
    %c0_3 = arith.constant 0 : index
    %c0_4 = arith.constant 0 : index
    %3 = vector.load %arg3[%c0_3, %c0_4] : memref<32x128xf32, #tpu.memory_space<vmem>>, vector<32x128xf32>
    tpu.vector_store %arg3[%c0_3, %c0_4], %2 {strides = array<i32>} : memref<32x128xf32, #tpu.memory_space<vmem>>, vector<32x128xf32>,
    return
  }
  func.func @transform_0(%arg0: i32) -> (i32, i32) {
    %c0_i32 = arith.constant 0 : i32
    %c0_i32_0 = arith.constant 0 : i32
    return %arg0, %c0_i32 : i32, i32
  }
  func.func @transform_1(%arg0: i32) -> (i32, i32) {
    %c0_i32 = arith.constant 0 : i32
    %c0_i32_0 = arith.constant 0 : i32
    %c0_i32_1 = arith.constant 0 : i32
    return %c0_i32, %c0_i32_0 : i32, i32
  }
  func.func @transform_2(%arg0: i32) -> (i32, i32) {
    %c0_i32 = arith.constant 0 : i32
    %c0_i32_0 = arith.constant 0 : i32
    return %arg0, %c0_i32 : i32, i32
  }
}

module attributes {stable_mosaic.version = 11 : i64} {
  func.func @_matmul_kernel(%arg0: i32, %arg1: memref<128x8xbf16, #tpu.memory_space<vmem>>, %arg2: memref<8x128xbf16, #tpu.memory_space<vmem>>, %arg3: memref<128x128xf32, #tpu.memory_space<vmem>>) attributes {dimension_semantics = [#tpu.dimension_semantics<parallel>], iteration_bounds = array<i64: 2>, scalar_prefetch = 0 : i64, scratch_operands = 0 : i64, tpu.core_type = #tpu.core_type<tc>, window_params = [{transform_indices = @transform_0, window_bounds = array<i64: 128, 8>}, {pipeline_mode = #tpu.pipeline_mode<synchronous>, transform_indices = @transform_1, window_bounds = array<i64: 8, 128>}, {transform_indices = @transform_2, window_bounds = array<i64: 128, 128>}]} {
    %c0 = arith.constant 0 : index
    %c0_0 = arith.constant 0 : index
    %0 = vector.load %arg1[%c0, %c0_0] : memref<128x8xbf16, #tpu.memory_space<vmem>>, vector<128x8xbf16>
    %c0_1 = arith.constant 0 : index
    %c0_2 = arith.constant 0 : index
    %1 = vector.load %arg2[%c0_1, %c0_2] : memref<8x128xbf16, #tpu.memory_space<vmem>>, vector<8x128xbf16>
    %cst = arith.constant dense<0.000000e+00> : vector<128x128xf32>
    %2 = tpu.matmul %0, %1, %cst {dimension_numbers = #tpu.dot_dimension_numbers<[1], [0], [0], [1], [0, 0, 1, 1], [], []>} : vector<128x8xbf16>, vector<8x128xbf16>, vector<128x128xf32> -> vector<128x128xf32>
    %c0_3 = arith.constant 0 : index
    %c0_4 = arith.constant 0 : index
    %3 = vector.load %arg3[%c0_3, %c0_4] : memref<128x128xf32, #tpu.memory_space<vmem>>, vector<128x128xf32>
    tpu.vector_store %arg3[%c0_3, %c0_4], %2 {strides = array<i32>} : memref<128x128xf32, #tpu.memory_space<vmem>>, vector<128x128xf32>,
    return
  }
  func.func @transform_0(%arg0: i32) -> (i32, i32) {
    %c0_i32 = arith.constant 0 : i32
    %c0_i32_0 = arith.constant 0 : i32
    return %arg0, %c0_i32 : i32, i32
  }
  func.func @transform_1(%arg0: i32) -> (i32, i32) {
    %c0_i32 = arith.constant 0 : i32
    %c0_i32_0 = arith.constant 0 : i32
    %c0_i32_1 = arith.constant 0 : i32
    return %c0_i32, %c0_i32_0 : i32, i32
  }
  func.func @transform_2(%arg0: i32) -> (i32, i32) {
    %c0_i32 = arith.constant 0 : i32
    %c0_i32_0 = arith.constant 0 : i32
    return %arg0, %c0_i32 : i32, i32
  }
}

module attributes {stable_mosaic.version = 11 : i64} {
  func.func @_matmul_kernel(%arg0: i32, %arg1: memref<512x8xbf16, #tpu.memory_space<vmem>>, %arg2: memref<8x64xbf16, #tpu.memory_space<vmem>>, %arg3: memref<512x64xf32, #tpu.memory_space<vmem>>) attributes {dimension_semantics = [#tpu.dimension_semantics<parallel>], iteration_bounds = array<i64: 2>, scalar_prefetch = 0 : i64, scratch_operands = 0 : i64, tpu.core_type = #tpu.core_type<tc>, window_params = [{transform_indices = @transform_0, window_bounds = array<i64: 512, 8>}, {pipeline_mode = #tpu.pipeline_mode<synchronous>, transform_indices = @transform_1, window_bounds = array<i64: 8, 64>}, {transform_indices = @transform_2, window_bounds = array<i64: 512, 64>}]} {
    %c0 = arith.constant 0 : index
    %c0_0 = arith.constant 0 : index
    %0 = vector.load %arg1[%c0, %c0_0] : memref<512x8xbf16, #tpu.memory_space<vmem>>, vector<512x8xbf16>
    %c0_1 = arith.constant 0 : index
    %c0_2 = arith.constant 0 : index
    %1 = vector.load %arg2[%c0_1, %c0_2] : memref<8x64xbf16, #tpu.memory_space<vmem>>, vector<8x64xbf16>
    %cst = arith.constant dense<0.000000e+00> : vector<512x64xf32>
    %2 = tpu.matmul %0, %1, %cst {dimension_numbers = #tpu.dot_dimension_numbers<[1], [0], [0], [1], [0, 0, 1, 1], [], []>} : vector<512x8xbf16>, vector<8x64xbf16>, vector<512x64xf32> -> vector<512x64xf32>
    %c0_3 = arith.constant 0 : index
    %c0_4 = arith.constant 0 : index
    %3 = vector.load %arg3[%c0_3, %c0_4] : memref<512x64xf32, #tpu.memory_space<vmem>>, vector<512x64xf32>
    tpu.vector_store %arg3[%c0_3, %c0_4], %2 {strides = array<i32>} : memref<512x64xf32, #tpu.memory_space<vmem>>, vector<512x64xf32>,
    return
  }
  func.func @transform_0(%arg0: i32) -> (i32, i32) {
    %c0_i32 = arith.constant 0 : i32
    %c0_i32_0 = arith.constant 0 : i32
    return %arg0, %c0_i32 : i32, i32
  }
  func.func @transform_1(%arg0: i32) -> (i32, i32) {
    %c0_i32 = arith.constant 0 : i32
    %c0_i32_0 = arith.constant 0 : i32
    %c0_i32_1 = arith.constant 0 : i32
    return %c0_i32, %c0_i32_0 : i32, i32
  }
  func.func @transform_2(%arg0: i32) -> (i32, i32) {
    %c0_i32 = arith.constant 0 : i32
    %c0_i32_0 = arith.constant 0 : i32
    return %arg0, %c0_i32 : i32, i32
  }
}

module attributes {stable_mosaic.version = 11 : i64} {
  func.func @_matmul_kernel(%arg0: i32, %arg1: memref<2048x4xbf16, #tpu.memory_space<vmem>>, %arg2: memref<4x16xbf16, #tpu.memory_space<vmem>>, %arg3: memref<2048x16xf32, #tpu.memory_space<vmem>>) attributes {dimension_semantics = [#tpu.dimension_semantics<parallel>], iteration_bounds = array<i64: 2>, scalar_prefetch = 0 : i64, scratch_operands = 0 : i64, tpu.core_type = #tpu.core_type<tc>, window_params = [{transform_indices = @transform_0, window_bounds = array<i64: 2048, 4>}, {pipeline_mode = #tpu.pipeline_mode<synchronous>, transform_indices = @transform_1, window_bounds = array<i64: 4, 16>}, {transform_indices = @transform_2, window_bounds = array<i64: 2048, 16>}]} {
    %c0 = arith.constant 0 : index
    %c0_0 = arith.constant 0 : index
    %0 = vector.load %arg1[%c0, %c0_0] : memref<2048x4xbf16, #tpu.memory_space<vmem>>, vector<2048x4xbf16>
    %c0_1 = arith.constant 0 : index
    %c0_2 = arith.constant 0 : index
    %1 = vector.load %arg2[%c0_1, %c0_2] : memref<4x16xbf16, #tpu.memory_space<vmem>>, vector<4x16xbf16>
    %cst = arith.constant dense<0.000000e+00> : vector<2048x16xf32>
    %2 = tpu.matmul %0, %1, %cst {dimension_numbers = #tpu.dot_dimension_numbers<[1], [0], [0], [1], [0, 0, 1, 1], [], []>} : vector<2048x4xbf16>, vector<4x16xbf16>, vector<2048x16xf32> -> vector<2048x16xf32>
    %c0_3 = arith.constant 0 : index
    %c0_4 = arith.constant 0 : index
    %3 = vector.load %arg3[%c0_3, %c0_4] : memref<2048x16xf32, #tpu.memory_space<vmem>>, vector<2048x16xf32>
    tpu.vector_store %arg3[%c0_3, %c0_4], %2 {strides = array<i32>} : memref<2048x16xf32, #tpu.memory_space<vmem>>, vector<2048x16xf32>,
    return
  }
  func.func @transform_0(%arg0: i32) -> (i32, i32) {
    %c0_i32 = arith.constant 0 : i32
    %c0_i32_0 = arith.constant 0 : i32
    return %arg0, %c0_i32 : i32, i32
  }
  func.func @transform_1(%arg0: i32) -> (i32, i32) {
    %c0_i32 = arith.constant 0 : i32
    %c0_i32_0 = arith.constant 0 : i32
    %c0_i32_1 = arith.constant 0 : i32
    return %c0_i32, %c0_i32_0 : i32, i32
  }
  func.func @transform_2(%arg0: i32) -> (i32, i32) {
    %c0_i32 = arith.constant 0 : i32
    %c0_i32_0 = arith.constant 0 : i32
    return %arg0, %c0_i32 : i32, i32
  }
}

</mosaic_0001>

<bundles_post_ra>
// kernel: decoder_forward.6
= control target key start
LH: loop header
LB: loop body
LE: loop exit
PB: predicated region body
PF: predicated region fallthrough
CT: control target
= control target key end

     0   :  { %s345_s9 = smov 0   ;;  %s365_s0 = inlined_call_operand.vmem [shape: bf16[64,16], index: 0, kind: input, shape index: {}]   ;;  %s366_s1 = inlined_call_operand.vmem [shape: bf16[16,128], index: 1, kind: input, shape index: {}]   ;;  %s367_s2 = inlined_call_operand.vmem [shape: f32[64,128], index: 2, kind: output, shape index: {}]  }
   0x1 LB: > { %s286_s10 = sadd.s32 4294967295, %s328_s9   ;;  %p290_p0 = scmp.ge.s32.totalorder %s328_s9, 1  ;;  %s328_s9 = sphi %s345_s9, %s12_s9  }
   0x2   : > { %p113_p1 = scmp.lt.s32.totalorder %s328_s9, 3 }
   0x4   : > { %p114_p2 = pnand %p290_p0, %p113_p1 }
   0x5   : > { %v319_v0 = vld [vmem:[%s366_s1] sm:$0xff] (!%p114_p2)   ;;  %s291_s13 = sshll.u32 (!%p114_p2), %s286_s10, 2  ;;  %vm170_vm0 = vcmask (!%p114_p2), 130048  }
   0x6   : > { %117 = sbr.rel (%p114_p2) target bundleno = 234 (0xea), region = 28  ;;  %p136_p3 = scmp.lt.s32.totalorder (!%p114_p2), %s291_s13, 7  ;;  %305 = vmatprep.subr.bf16.mxu0 (!%p114_p2), %v319_v0 }
   0x7   : > { %306 = vmatpush3.bf16.msra.mxu0 (!%p114_p2), %v319_v0 }
   0xd   : > { %s369_s13 = smov (!%p136_p3, %s291_s13), 7 }
   0xe   : > { %s292_s14 = sshll.u32 %s369_s13, 2  ;;  %s294_s18 = sshll.u32 %s369_s13, 3 }
   0xf   : > { %s139_s17 = scalar_lea.vmem %s365_s0, %s292_s14  ;;  %s145_s21 = scalar_lea.vmem %s367_s2, %s294_s18 }
  0x10   : > { %v320_v1 = vld [vmem:[%s139_s17] sm:$0xff]   ;;  %v321_v2 = vld [vmem:[%s139_s17 + $0x8] sm:$0xff]  }
  0x11   : > { %307 = vmatprep.mubr.msk.bf16.mxu0 %vm170_vm0, %v320_v1 }
  0x12   : > { %308 = vmatmul.mubr.msk.bf16.vlgmr.msra.gmra.mrb[0].mxu0 %vm170_vm0, %v321_v2 }
  0xe5   : > { %v309_v3 = vpop.f32.mrb[0].mxu0 }
  0xe6   : > { %v211_v4 = vpop.f32.mrb[1].mxu0  ;;  %228 = vst [vmem:[%s145_s21 + $0x10] sm:$0xff] %v309_v3 }
  0xe7   : > { %226 = vst [vmem:[%s145_s21] sm:$0xff] %v211_v4  ;;  %v310_v5 = vpop.f32.mrb[2].mxu0 }
  0xe8   : > { %v214_v6 = vpop.f32.mrb[3].mxu0  ;;  %229 = vst [vmem:[%s145_s21 + $0x18] sm:$0xff] %v310_v5 }
  0xe9   : > { %227 = vst [vmem:[%s145_s21 + $0x8] sm:$0xff] %v214_v6 }
  0xea PF: > { %s12_s9 = sadd.s32 1, %s328_s9  }
  0xeb   : > { %p9_p4 = scmp.ge.s32.totalorder %s12_s9, 4  }
  0xed   :  { %11 = sbr.rel (!%p9_p4) target bundleno = 1 (0x1), region = 58 }

// kernel: decoder_forward.5
= control target key start
LH: loop header
LB: loop body
LE: loop exit
PB: predicated region body
PF: predicated region fallthrough
CT: control target
= control target key end

     0   :  { %v83_v1 = vmov 0   ;;  %vm25_vm0 = vcmask 130048   ;;  %s114_s1 = inlined_call_operand.vmem [shape: bf16[16,256], index: 1, kind: input, shape index: {}]   ;;  %s115_s0 = inlined_call_operand.vmem [shape: bf16[8,16], index: 0, kind: input, shape index: {}]   ;;  %s116_s2 = inlined_call_operand.vmem [shape: f32[8,256], index: 2, kind: output, shape index: {}]  }
   0x1   :  { %v80_v0 = vld [vmem:[%s114_s1 + $0x4] ss:$8 sps:$4 sm:$0xff]   ;;  %61 = vmatprep.mubr.bf16.mxu0 %v83_v1  ;;  %v82_v2 = vld [vmem:[%s114_s1] ss:$8 sps:$4 sm:$0xff]  }
   0x2   :  { %29 = vmatprep.subr.bf16.mxu0 %v80_v0  ;;  %v12_v3 = vld [vmem:[%s115_s0] sm:$0xf] }
   0x3   :  { %30 = vmatpush1.bf16.msra.mxu0 %v82_v2 }
   0x6   :  { %78 = vmatmul.mubr.msk.bf16.vlgmr.msra.gmra.mrb[0].mxu0 %vm25_vm0, %v12_v3 }
  0xd9   :  { %v63_v4 = vpop.f32.mrb[0].mxu0 }
  0xda   :  { %70 = vst [vmem:[%s116_s2] sm:$0xff] %v63_v4  ;;  %v65_v5 = vpop.f32.mrb[1].mxu0 }
  0xdb   :  { %71 = vst [vmem:[%s116_s2 + $0x8] sm:$0xff] %v65_v5  ;;  %v67_v6 = vpop.f32.mrb[2].mxu0 }
  0xdc   :  { %v68_v7 = vpop.f32.mrb[3].mxu0 }

// kernel: decoder_forward.7
= control target key start
LH: loop header
LB: loop body
LE: loop exit
PB: predicated region body
PF: predicated region fallthrough
CT: control target
= control target key end

     0   :  { %s500_s9 = smov 0   ;;  %s546_s0 = inlined_call_operand.vmem [shape: bf16[256,8], index: 0, kind: input, shape index: {}]   ;;  %s547_s1 = inlined_call_operand.vmem [shape: bf16[8,128], index: 1, kind: input, shape index: {}]   ;;  %s548_s2 = inlined_call_operand.vmem [shape: f32[256,128], index: 2, kind: output, shape index: {}]  }
   0x1 LB: > { %s403_s10 = sadd.s32 4294967295, %s483_s9   ;;  %p407_p0 = scmp.ge.s32.totalorder %s483_s9, 1  ;;  %s483_s9 = sphi %s500_s9, %s12_s9  }
   0x2   : > { %p113_p1 = scmp.lt.s32.totalorder %s483_s9, 3 }
   0x4   : > { %p114_p2 = pnand %p407_p0, %p113_p1 }
   0x5   : > { %v164_v0 = vld [vmem:[%s547_s1] sm:$0xf] (!%p114_p2)  ;;  %vm230_vm0 = vcmask (!%p114_p2), 1043456   ;;  %s408_s13 = sshll.u32 (!%p114_p2), %s403_s10, 4  ;;  %vm205_vm1 = vcmask (!%p114_p2), 64512  }
   0x6   : > { %117 = sbr.rel (%p114_p2) target bundleno = 243 (0xf3), region = 28  ;;  %459 = vmatprep.subr.msk.bf16.mxu0 (!%p114_p2), %vm230_vm0, %v164_v0  ;;  %460 = vmatprep.subr.msk.bf16.mxu1 (!%p114_p2), %vm230_vm0, %v164_v0  ;;  %v232_v1 = vsel (!%p114_p2), %vm230_vm0, %v164_v0, 0  ;;  %p136_p3 = scmp.lt.s32.totalorder (!%p114_p2), %s408_s13, 31 }
   0x7   : > { %440 = vmatpush3.bf16.msra.mxu0 (!%p114_p2), %v232_v1  ;;  %458 = vmatpush3.bf16.msra.mxu1 (!%p114_p2), %v232_v1 }
   0xd   : > { %s550_s13 = smov (!%p136_p3, %s408_s13), 31 }
   0xe   : > { %s409_s14 = sshll.u32 %s550_s13, 2  ;;  %s411_s18 = sshll.u32 %s550_s13, 3 }
   0xf   : > { %s139_s17 = scalar_lea.vmem %s546_s0, %s409_s14  ;;  %s525_s21 = scalar_lea.vmem %s548_s2, %s411_s18 }
  0x10   : > { %v469_v2 = vld [vmem:[%s139_s17] sm:$0xff]   ;;  %v471_v4 = vld [vmem:[%s139_s17 + $0x8] sm:$0xff]   ;;  %v473_v6 = vld [vmem:[%s139_s17 + $0x10] sm:$0xff]  }
  0x11   : > { %v470_v3 = vld [vmem:[%s139_s17 + $0x20] sm:$0xff]   ;;  %441 = vmatprep.mubr.msk.bf16.mxu0 %vm205_vm1, %v469_v2  ;;  %v472_v5 = vld [vmem:[%s139_s17 + $0x28] sm:$0xff]   ;;  %v474_v7 = vld [vmem:[%s139_s17 + $0x30] sm:$0xff]  }
  0x12   : > { %449 = vmatprep.mubr.msk.bf16.mxu1 %vm205_vm1, %v470_v3  ;;  %442 = vmatmul.mubr.msk.bf16.vlgmr.msra.gmra.mrb[0].mxu0 %vm205_vm1, %v471_v4  ;;  %v475_v8 = vld [vmem:[%s139_s17 + $0x18] sm:$0xff]  }
  0x13   : > { %450 = vmatmul.mubr.msk.bf16.vlgmr.msra.gmra.mrb[0].mxu1 %vm205_vm1, %v472_v5  ;;  %445 = vmatprep.mubr.msk.bf16.mxu0 %vm205_vm1, %v473_v6  ;;  %v476_v9 = vld [vmem:[%s139_s17 + $0x38] sm:$0xff]  }
  0x14   : > { %453 = vmatprep.mubr.msk.bf16.mxu1 %vm205_vm1, %v474_v7 }
  0x1a   : > { %446 = vmatmul.mubr.msk.bf16.gmra.mrb[4].mxu0 %vm205_vm1, %v475_v8 }
  0x1b   : > { %454 = vmatmul.mubr.msk.bf16.gmra.mrb[4].mxu1 %vm205_vm1, %v476_v9 }
  0xe5   : > { %v443_v10 = vpop.f32.mrb[0].mxu0 }
  0xe6   : > { %333 = vst [vmem:[%s525_s21 + $0x10] sm:$0xff] %v443_v10  ;;  %v451_v11 = vpop.f32.mrb[0].mxu1  ;;  %v268_v12 = vpop.f32.mrb[1].mxu0 }
  0xe7   : > { %341 = vst [vmem:[%s525_s21 + $0x50] sm:$0xff] %v451_v11  ;;  %331 = vst [vmem:[%s525_s21] sm:$0xff] %v268_v12  ;;  %v300_v13 = vpop.f32.mrb[1].mxu1  ;;  %v444_v14 = vpop.f32.mrb[2].mxu0 }
  0xe8   : > { %339 = vst [vmem:[%s525_s21 + $0x40] sm:$0xff] %v300_v13  ;;  %334 = vst [vmem:[%s525_s21 + $0x18] sm:$0xff] %v444_v14  ;;  %v452_v15 = vpop.f32.mrb[2].mxu1  ;;  %v271_v16 = vpop.f32.mrb[3].mxu0 }
  0xe9   : > { %342 = vst [vmem:[%s525_s21 + $0x58] sm:$0xff] %v452_v15  ;;  %332 = vst [vmem:[%s525_s21 + $0x8] sm:$0xff] %v271_v16  ;;  %v303_v17 = vpop.f32.mrb[3].mxu1 }
  0xea   : > { %340 = vst [vmem:[%s525_s21 + $0x48] sm:$0xff] %v303_v17 }
  0xed   : > { %v447_v18 = vpop.f32.mrb[4].mxu0 }
  0xee   : > { %337 = vst [vmem:[%s525_s21 + $0x30] sm:$0xff] %v447_v18  ;;  %v455_v19 = vpop.f32.mrb[4].mxu1  ;;  %v284_v20 = vpop.f32.mrb[5].mxu0 }
  0xef   : > { %345 = vst [vmem:[%s525_s21 + $0x70] sm:$0xff] %v455_v19  ;;  %335 = vst [vmem:[%s525_s21 + $0x20] sm:$0xff] %v284_v20  ;;  %v316_v21 = vpop.f32.mrb[5].mxu1  ;;  %v448_v22 = vpop.f32.mrb[6].mxu0 }
  0xf0   : > { %343 = vst [vmem:[%s525_s21 + $0x60] sm:$0xff] %v316_v21  ;;  %338 = vst [vmem:[%s525_s21 + $0x38] sm:$0xff] %v448_v22  ;;  %v456_v23 = vpop.f32.mrb[6].mxu1  ;;  %v287_v24 = vpop.f32.mrb[7].mxu0 }
  0xf1   : > { %346 = vst [vmem:[%s525_s21 + $0x78] sm:$0xff] %v456_v23  ;;  %336 = vst [vmem:[%s525_s21 + $0x28] sm:$0xff] %v287_v24  ;;  %v319_v25 = vpop.f32.mrb[7].mxu1 }
  0xf2   : > { %344 = vst [vmem:[%s525_s21 + $0x68] sm:$0xff] %v319_v25 }
  0xf3 PF: > { %s12_s9 = sadd.s32 1, %s483_s9  }
  0xf4   : > { %p9_p4 = scmp.ge.s32.totalorder %s12_s9, 4  }
  0xf6   :  { %11 = sbr.rel (!%p9_p4) target bundleno = 1 (0x1), region = 58 }

// kernel: decoder_forward.8
= control target key start
LH: loop header
LB: loop body
LE: loop exit
PB: predicated region body
PF: predicated region fallthrough
CT: control target
= control target key end

     0   :  { %s1125_s9 = smov 0   ;;  %s1345_s0 = inlined_call_operand.vmem [shape: bf16[1024,8], index: 0, kind: input, shape index: {}]   ;;  %s1346_s1 = inlined_call_operand.vmem [shape: bf16[8,64], index: 1, kind: input, shape index: {}]   ;;  %s1347_s2 = inlined_call_operand.vmem [shape: f32[1024,64], index: 2, kind: output, shape index: {}]  }
   0x1 LB: > { %s884_s10 = sadd.s32 4294967295, %s1108_s9   ;;  %p888_p0 = scmp.ge.s32.totalorder %s1108_s9, 1  ;;  %s1108_s9 = sphi %s1125_s9, %s12_s9  }
   0x2   : > { %p113_p1 = scmp.lt.s32.totalorder %s1108_s9, 3 }
   0x4   : > { %p114_p2 = pnand %p888_p0, %p113_p1 }
   0x5   : > { %v212_v0 = vld [vmem:[%s1346_s1] sm:$0xf] (!%p114_p2)  ;;  %vm470_vm0 = vcmask (!%p114_p2), 1043456   ;;  %s889_s13 = sshll.u32 (!%p114_p2), %s884_s10, 6  ;;  %vm373_vm1 = vcmask (!%p114_p2), 64512   ;;  %vm763_vm2 = vcmask (!%p114_p2), 523264  }
   0x6   : > { %117 = sbr.rel (%p114_p2) target bundleno = 291 (0x123), region = 28  ;;  %1060 = vmatprep.subr.msk.bf16.mxu0 (!%p114_p2), %vm470_vm0, %v212_v0  ;;  %1061 = vmatprep.subr.msk.bf16.mxu1 (!%p114_p2), %vm470_vm0, %v212_v0  ;;  %v472_v1 = vsel (!%p114_p2), %vm470_vm0, %v212_v0, 0  ;;  %p136_p3 = scmp.lt.s32.totalorder (!%p114_p2), %s889_s13, 127 }
   0x7   : > { %993 = vmatpush3.bf16.msra.mxu0 (!%p114_p2), %v472_v1  ;;  %1059 = vmatpush3.bf16.msra.mxu1 (!%p114_p2), %v472_v1 }
   0xd   : > { %s1349_s13 = smov (!%p136_p3, %s889_s13), 127 }
   0xe   : > { %s890_s14 = sshll.u32 %s1349_s13, 2  ;;  %s892_s18 = sshll.u32 %s1349_s13, 3 }
   0xf   : > { %s1142_s17 = scalar_lea.vmem %s1345_s0, %s890_s14  ;;  %s1212_s21 = scalar_lea.vmem %s1347_s2, %s892_s18 }
  0x10   : > { %v1070_v2 = vld [vmem:[%s1142_s17] sm:$0xff]   ;;  %v1072_v4 = vld [vmem:[%s1142_s17 + $0x8] sm:$0xff]   ;;  %v1074_v6 = vld [vmem:[%s1142_s17 + $0x10] sm:$0xff]  }
  0x11   : > { %v1071_v3 = vld [vmem:[%s1142_s17 + $0x80] sm:$0xff]   ;;  %994 = vmatprep.mubr.msk.bf16.mxu0 %vm373_vm1, %v1070_v2  ;;  %v1073_v5 = vld [vmem:[%s1142_s17 + $0x88] sm:$0xff]   ;;  %v1075_v7 = vld [vmem:[%s1142_s17 + $0x90] sm:$0xff]  }
  0x12   : > { %1026 = vmatprep.mubr.msk.bf16.mxu1 %vm373_vm1, %v1071_v3  ;;  %995 = vmatmul.mubr.msk.bf16.vlgmr.msra.gmra.mrb[0].mxu0 %vm373_vm1, %v1072_v4  ;;  %v1076_v8 = vld [vmem:[%s1142_s17 + $0x18] sm:$0xff]   ;;  %v1078_v10 = vld [vmem:[%s1142_s17 + $0x20] sm:$0xff]   ;;  %v1080_v12 = vld [vmem:[%s1142_s17 + $0x28] sm:$0xff]  }
  0x13   : > { %1027 = vmatmul.mubr.msk.bf16.vlgmr.msra.gmra.mrb[0].mxu1 %vm373_vm1, %v1073_v5  ;;  %998 = vmatprep.mubr.msk.bf16.mxu0 %vm373_vm1, %v1074_v6  ;;  %v1077_v9 = vld [vmem:[%s1142_s17 + $0x98] sm:$0xff]   ;;  %v1079_v11 = vld [vmem:[%s1142_s17 + $0xa0] sm:$0xff]   ;;  %v1081_v13 = vld [vmem:[%s1142_s17 + $0xa8] sm:$0xff]  }
  0x14   : > { %1030 = vmatprep.mubr.msk.bf16.mxu1 %vm373_vm1, %v1075_v7  ;;  %v1082_v14 = vld [vmem:[%s1142_s17 + $0x30] sm:$0xff]   ;;  %v1084_v16 = vld [vmem:[%s1142_s17 + $0x38] sm:$0xff]   ;;  %v1086_v18 = vld [vmem:[%s1142_s17 + $0x40] sm:$0xff]  }
  0x15   : > { %v1083_v15 = vld [vmem:[%s1142_s17 + $0xb0] sm:$0xff]   ;;  %v1085_v17 = vld [vmem:[%s1142_s17 + $0xb8] sm:$0xff]   ;;  %v1087_v19 = vld [vmem:[%s1142_s17 + $0xc0] sm:$0xff]  }
  0x16   : > { %v1088_v20 = vld [vmem:[%s1142_s17 + $0x48] sm:$0xff]   ;;  %v1090_v22 = vld [vmem:[%s1142_s17 + $0x50] sm:$0xff]   ;;  %v1092_v24 = vld [vmem:[%s1142_s17 + $0x58] sm:$0xff]  }
  0x17   : > { %v1089_v21 = vld [vmem:[%s1142_s17 + $0xc8] sm:$0xff]   ;;  %v1091_v23 = vld [vmem:[%s1142_s17 + $0xd0] sm:$0xff]   ;;  %v1093_v25 = vld [vmem:[%s1142_s17 + $0xd8] sm:$0xff]  }
  0x18   : > { %v1094_v26 = vld [vmem:[%s1142_s17 + $0x60] sm:$0xff]   ;;  %v1096_v28 = vld [vmem:[%s1142_s17 + $0x68] sm:$0xff]   ;;  %v1098_v30 = vld [vmem:[%s1142_s17 + $0x70] sm:$0xff]  }
  0x19   : > { %v1095_v27 = vld [vmem:[%s1142_s17 + $0xe0] sm:$0xff]   ;;  %v1097_v29 = vld [vmem:[%s1142_s17 + $0xe8] sm:$0xff]   ;;  %v1099_v31 = vld [vmem:[%s1142_s17 + $0xf0] sm:$0xff]  }
  0x1a   : > { %999 = vmatmul.mubr.msk.bf16.gmra.mrb[4].mxu0 %vm373_vm1, %v1076_v8  ;;  %v1100_v32 = vld [vmem:[%s1142_s17 + $0x78] sm:$0xff]  }
  0x1b   : > { %1031 = vmatmul.mubr.msk.bf16.gmra.mrb[4].mxu1 %vm373_vm1, %v1077_v9  ;;  %1002 = vmatprep.mubr.msk.bf16.mxu0 %vm373_vm1, %v1078_v10  ;;  %v1101_v33 = vld [vmem:[%s1142_s17 + $0xf8] sm:$0xff]  }
  0x1c   : > { %1034 = vmatprep.mubr.msk.bf16.mxu1 %vm373_vm1, %v1079_v11 }
  0x22   : > { %1003 = vmatmul.mubr.msk.bf16.gmra.mrb[8].mxu0 %vm373_vm1, %v1080_v12 }
  0x23   : > { %1035 = vmatmul.mubr.msk.bf16.gmra.mrb[8].mxu1 %vm373_vm1, %v1081_v13  ;;  %1006 = vmatprep.mubr.msk.bf16.mxu0 %vm373_vm1, %v1082_v14 }
  0x24   : > { %1038 = vmatprep.mubr.msk.bf16.mxu1 %vm373_vm1, %v1083_v15 }
  0x2a   : > { %1007 = vmatmul.mubr.msk.bf16.gmra.mrb[12].mxu0 %vm373_vm1, %v1084_v16 }
  0x2b   : > { %1039 = vmatmul.mubr.msk.bf16.gmra.mrb[12].mxu1 %vm373_vm1, %v1085_v17  ;;  %1010 = vmatprep.mubr.msk.bf16.mxu0 %vm373_vm1, %v1086_v18 }
  0x2c   : > { %1042 = vmatprep.mubr.msk.bf16.mxu1 %vm373_vm1, %v1087_v19 }
  0x32   : > { %1011 = vmatmul.mubr.msk.bf16.gmra.mrb[16].mxu0 %vm373_vm1, %v1088_v20 }
  0x33   : > { %1043 = vmatmul.mubr.msk.bf16.gmra.mrb[16].mxu1 %vm373_vm1, %v1089_v21  ;;  %1014 = vmatprep.mubr.msk.bf16.mxu0 %vm373_vm1, %v1090_v22 }
  0x34   : > { %1046 = vmatprep.mubr.msk.bf16.mxu1 %vm373_vm1, %v1091_v23 }
  0x3a   : > { %1015 = vmatmul.mubr.msk.bf16.gmra.mrb[20].mxu0 %vm373_vm1, %v1092_v24 }
  0x3b   : > { %1047 = vmatmul.mubr.msk.bf16.gmra.mrb[20].mxu1 %vm373_vm1, %v1093_v25  ;;  %1018 = vmatprep.mubr.msk.bf16.mxu0 %vm373_vm1, %v1094_v26 }
  0x3c   : > { %1050 = vmatprep.mubr.msk.bf16.mxu1 %vm373_vm1, %v1095_v27 }
  0x42   : > { %1019 = vmatmul.mubr.msk.bf16.gmra.mrb[24].mxu0 %vm373_vm1, %v1096_v28 }
  0x43   : > { %1051 = vmatmul.mubr.msk.bf16.gmra.mrb[24].mxu1 %vm373_vm1, %v1097_v29  ;;  %1022 = vmatprep.mubr.msk.bf16.mxu0 %vm373_vm1, %v1098_v30 }
  0x44   : > { %1054 = vmatprep.mubr.msk.bf16.mxu1 %vm373_vm1, %v1099_v31 }
  0x4a   : > { %1023 = vmatmul.mubr.msk.bf16.gmra.mrb[28].mxu0 %vm373_vm1, %v1100_v32 }
  0x4b   : > { %1055 = vmatmul.mubr.msk.bf16.gmra.mrb[28].mxu1 %vm373_vm1, %v1101_v33 }
  0xe5   : > { %v996_v34 = vpop.f32.mrb[0].mxu0 }
  0xe6   : > { %766 = vst.msk [vmem:[%s1212_s21 + $0x10] sm:$0xff] %vm763_vm2, %v996_v34  ;;  %v1028_v35 = vpop.f32.mrb[0].mxu1  ;;  %v508_v36 = vpop.f32.mrb[1].mxu0 }
  0xe7   : > { %798 = vst.msk [vmem:[%s1212_s21 + $0x110] sm:$0xff] %vm763_vm2, %v1028_v35  ;;  %764 = vst.msk [vmem:[%s1212_s21] sm:$0xff] %vm763_vm2, %v508_v36  ;;  %v636_v37 = vpop.f32.mrb[1].mxu1  ;;  %v997_v38 = vpop.f32.mrb[2].mxu0 }
  0xe8   : > { %796 = vst.msk [vmem:[%s1212_s21 + $0x100] sm:$0xff] %vm763_vm2, %v636_v37  ;;  %767 = vst.msk [vmem:[%s1212_s21 + $0x18] sm:$0xff] %vm763_vm2, %v997_v38  ;;  %v1029_v39 = vpop.f32.mrb[2].mxu1  ;;  %v511_v40 = vpop.f32.mrb[3].mxu0 }
  0xe9   : > { %799 = vst.msk [vmem:[%s1212_s21 + $0x118] sm:$0xff] %vm763_vm2, %v1029_v39  ;;  %765 = vst.msk [vmem:[%s1212_s21 + $0x8] sm:$0xff] %vm763_vm2, %v511_v40  ;;  %v639_v41 = vpop.f32.mrb[3].mxu1 }
  0xea   : > { %797 = vst.msk [vmem:[%s1212_s21 + $0x108] sm:$0xff] %vm763_vm2, %v639_v41 }
  0xed   : > { %v1000_v42 = vpop.f32.mrb[4].mxu0 }
  0xee   : > { %770 = vst.msk [vmem:[%s1212_s21 + $0x30] sm:$0xff] %vm763_vm2, %v1000_v42  ;;  %v1032_v43 = vpop.f32.mrb[4].mxu1  ;;  %v524_v44 = vpop.f32.mrb[5].mxu0 }
  0xef   : > { %802 = vst.msk [vmem:[%s1212_s21 + $0x130] sm:$0xff] %vm763_vm2, %v1032_v43  ;;  %768 = vst.msk [vmem:[%s1212_s21 + $0x20] sm:$0xff] %vm763_vm2, %v524_v44  ;;  %v652_v45 = vpop.f32.mrb[5].mxu1  ;;  %v1001_v46 = vpop.f32.mrb[6].mxu0 }
  0xf0   : > { %800 = vst.msk [vmem:[%s1212_s21 + $0x120] sm:$0xff] %vm763_vm2, %v652_v45  ;;  %771 = vst.msk [vmem:[%s1212_s21 + $0x38] sm:$0xff] %vm763_vm2, %v1001_v46  ;;  %v1033_v47 = vpop.f32.mrb[6].mxu1  ;;  %v527_v48 = vpop.f32.mrb[7].mxu0 }
  0xf1   : > { %803 = vst.msk [vmem:[%s1212_s21 + $0x138] sm:$0xff] %vm763_vm2, %v1033_v47  ;;  %769 = vst.msk [vmem:[%s1212_s21 + $0x28] sm:$0xff] %vm763_vm2, %v527_v48  ;;  %v655_v49 = vpop.f32.mrb[7].mxu1 }
  0xf2   : > { %801 = vst.msk [vmem:[%s1212_s21 + $0x128] sm:$0xff] %vm763_vm2, %v655_v49 }
  0xf5   : > { %v1004_v50 = vpop.f32.mrb[8].mxu0 }
  0xf6   : > { %774 = vst.msk [vmem:[%s1212_s21 + $0x50] sm:$0xff] %vm763_vm2, %v1004_v50  ;;  %v1036_v51 = vpop.f32.mrb[8].mxu1  ;;  %v540_v52 = vpop.f32.mrb[9].mxu0 }
  0xf7   : > { %806 = vst.msk [vmem:[%s1212_s21 + $0x150] sm:$0xff] %vm763_vm2, %v1036_v51  ;;  %772 = vst.msk [vmem:[%s1212_s21 + $0x40] sm:$0xff] %vm763_vm2, %v540_v52  ;;  %v668_v53 = vpop.f32.mrb[9].mxu1  ;;  %v1005_v54 = vpop.f32.mrb[10].mxu0 }
  0xf8   : > { %804 = vst.msk [vmem:[%s1212_s21 + $0x140] sm:$0xff] %vm763_vm2, %v668_v53  ;;  %775 = vst.msk [vmem:[%s1212_s21 + $0x58] sm:$0xff] %vm763_vm2, %v1005_v54  ;;  %v1037_v55 = vpop.f32.mrb[10].mxu1  ;;  %v543_v56 = vpop.f32.mrb[11].mxu0 }
  0xf9   : > { %807 = vst.msk [vmem:[%s1212_s21 + $0x158] sm:$0xff] %vm763_vm2, %v1037_v55  ;;  %773 = vst.msk [vmem:[%s1212_s21 + $0x48] sm:$0xff] %vm763_vm2, %v543_v56  ;;  %v671_v57 = vpop.f32.mrb[11].mxu1 }
  0xfa   : > { %805 = vst.msk [vmem:[%s1212_s21 + $0x148] sm:$0xff] %vm763_vm2, %v671_v57 }
  0xfd   : > { %v1008_v58 = vpop.f32.mrb[12].mxu0 }
  0xfe   : > { %778 = vst.msk [vmem:[%s1212_s21 + $0x70] sm:$0xff] %vm763_vm2, %v1008_v58  ;;  %v1040_v59 = vpop.f32.mrb[12].mxu1  ;;  %v556_v60 = vpop.f32.mrb[13].mxu0 }
  0xff   : > { %810 = vst.msk [vmem:[%s1212_s21 + $0x170] sm:$0xff] %vm763_vm2, %v1040_v59  ;;  %776 = vst.msk [vmem:[%s1212_s21 + $0x60] sm:$0xff] %vm763_vm2, %v556_v60  ;;  %v684_v61 = vpop.f32.mrb[13].mxu1  ;;  %v1009_v62 = vpop.f32.mrb[14].mxu0 }
 0x100   : > { %808 = vst.msk [vmem:[%s1212_s21 + $0x160] sm:$0xff] %vm763_vm2, %v684_v61  ;;  %779 = vst.msk [vmem:[%s1212_s21 + $0x78] sm:$0xff] %vm763_vm2, %v1009_v62  ;;  %v1041_v63 = vpop.f32.mrb[14].mxu1  ;;  %v559_v0 = vpop.f32.mrb[15].mxu0 }
 0x101   : > { %811 = vst.msk [vmem:[%s1212_s21 + $0x178] sm:$0xff] %vm763_vm2, %v1041_v63  ;;  %777 = vst.msk [vmem:[%s1212_s21 + $0x68] sm:$0xff] %vm763_vm2, %v559_v0  ;;  %v687_v1 = vpop.f32.mrb[15].mxu1 }
 0x102   : > { %809 = vst.msk [vmem:[%s1212_s21 + $0x168] sm:$0xff] %vm763_vm2, %v687_v1 }
 0x105   : > { %v1012_v2 = vpop.f32.mrb[16].mxu0 }
 0x106   : > { %782 = vst.msk [vmem:[%s1212_s21 + $0x90] sm:$0xff] %vm763_vm2, %v1012_v2  ;;  %v1044_v3 = vpop.f32.mrb[16].mxu1  ;;  %v572_v4 = vpop.f32.mrb[17].mxu0 }
 0x107   : > { %814 = vst.msk [vmem:[%s1212_s21 + $0x190] sm:$0xff] %vm763_vm2, %v1044_v3  ;;  %780 = vst.msk [vmem:[%s1212_s21 + $0x80] sm:$0xff] %vm763_vm2, %v572_v4  ;;  %v700_v5 = vpop.f32.mrb[17].mxu1  ;;  %v1013_v6 = vpop.f32.mrb[18].mxu0 }
 0x108   : > { %812 = vst.msk [vmem:[%s1212_s21 + $0x180] sm:$0xff] %vm763_vm2, %v700_v5  ;;  %783 = vst.msk [vmem:[%s1212_s21 + $0x98] sm:$0xff] %vm763_vm2, %v1013_v6  ;;  %v1045_v7 = vpop.f32.mrb[18].mxu1  ;;  %v575_v8 = vpop.f32.mrb[19].mxu0 }
 0x109   : > { %815 = vst.msk [vmem:[%s1212_s21 + $0x198] sm:$0xff] %vm763_vm2, %v1045_v7  ;;  %781 = vst.msk [vmem:[%s1212_s21 + $0x88] sm:$0xff] %vm763_vm2, %v575_v8  ;;  %v703_v9 = vpop.f32.mrb[19].mxu1 }
 0x10a   : > { %813 = vst.msk [vmem:[%s1212_s21 + $0x188] sm:$0xff] %vm763_vm2, %v703_v9 }
 0x10d   : > { %v1016_v10 = vpop.f32.mrb[20].mxu0 }
 0x10e   : > { %786 = vst.msk [vmem:[%s1212_s21 + $0xb0] sm:$0xff] %vm763_vm2, %v1016_v10  ;;  %v1048_v11 = vpop.f32.mrb[20].mxu1  ;;  %v588_v12 = vpop.f32.mrb[21].mxu0 }
 0x10f   : > { %818 = vst.msk [vmem:[%s1212_s21 + $0x1b0] sm:$0xff] %vm763_vm2, %v1048_v11  ;;  %784 = vst.msk [vmem:[%s1212_s21 + $0xa0] sm:$0xff] %vm763_vm2, %v588_v12  ;;  %v716_v13 = vpop.f32.mrb[21].mxu1  ;;  %v1017_v14 = vpop.f32.mrb[22].mxu0 }
 0x110   : > { %816 = vst.msk [vmem:[%s1212_s21 + $0x1a0] sm:$0xff] %vm763_vm2, %v716_v13  ;;  %787 = vst.msk [vmem:[%s1212_s21 + $0xb8] sm:$0xff] %vm763_vm2, %v1017_v14  ;;  %v1049_v15 = vpop.f32.mrb[22].mxu1  ;;  %v591_v16 = vpop.f32.mrb[23].mxu0 }
 0x111   : > { %819 = vst.msk [vmem:[%s1212_s21 + $0x1b8] sm:$0xff] %vm763_vm2, %v1049_v15  ;;  %785 = vst.msk [vmem:[%s1212_s21 + $0xa8] sm:$0xff] %vm763_vm2, %v591_v16  ;;  %v719_v17 = vpop.f32.mrb[23].mxu1 }
 0x112   : > { %817 = vst.msk [vmem:[%s1212_s21 + $0x1a8] sm:$0xff] %vm763_vm2, %v719_v17 }
 0x115   : > { %v1020_v18 = vpop.f32.mrb[24].mxu0 }
 0x116   : > { %790 = vst.msk [vmem:[%s1212_s21 + $0xd0] sm:$0xff] %vm763_vm2, %v1020_v18  ;;  %v1052_v19 = vpop.f32.mrb[24].mxu1  ;;  %v604_v20 = vpop.f32.mrb[25].mxu0 }
 0x117   : > { %822 = vst.msk [vmem:[%s1212_s21 + $0x1d0] sm:$0xff] %vm763_vm2, %v1052_v19  ;;  %788 = vst.msk [vmem:[%s1212_s21 + $0xc0] sm:$0xff] %vm763_vm2, %v604_v20  ;;  %v732_v21 = vpop.f32.mrb[25].mxu1  ;;  %v1021_v22 = vpop.f32.mrb[26].mxu0 }
 0x118   : > { %820 = vst.msk [vmem:[%s1212_s21 + $0x1c0] sm:$0xff] %vm763_vm2, %v732_v21  ;;  %791 = vst.msk [vmem:[%s1212_s21 + $0xd8] sm:$0xff] %vm763_vm2, %v1021_v22  ;;  %v1053_v23 = vpop.f32.mrb[26].mxu1  ;;  %v607_v24 = vpop.f32.mrb[27].mxu0 }
 0x119   : > { %823 = vst.msk [vmem:[%s1212_s21 + $0x1d8] sm:$0xff] %vm763_vm2, %v1053_v23  ;;  %789 = vst.msk [vmem:[%s1212_s21 + $0xc8] sm:$0xff] %vm763_vm2, %v607_v24  ;;  %v735_v25 = vpop.f32.mrb[27].mxu1 }
 0x11a   : > { %821 = vst.msk [vmem:[%s1212_s21 + $0x1c8] sm:$0xff] %vm763_vm2, %v735_v25 }
 0x11d   : > { %v1024_v26 = vpop.f32.mrb[28].mxu0 }
 0x11e   : > { %794 = vst.msk [vmem:[%s1212_s21 + $0xf0] sm:$0xff] %vm763_vm2, %v1024_v26  ;;  %v1056_v27 = vpop.f32.mrb[28].mxu1  ;;  %v620_v28 = vpop.f32.mrb[29].mxu0 }
 0x11f   : > { %826 = vst.msk [vmem:[%s1212_s21 + $0x1f0] sm:$0xff] %vm763_vm2, %v1056_v27  ;;  %792 = vst.msk [vmem:[%s1212_s21 + $0xe0] sm:$0xff] %vm763_vm2, %v620_v28  ;;  %v748_v29 = vpop.f32.mrb[29].mxu1  ;;  %v1025_v30 = vpop.f32.mrb[30].mxu0 }
 0x120   : > { %824 = vst.msk [vmem:[%s1212_s21 + $0x1e0] sm:$0xff] %vm763_vm2, %v748_v29  ;;  %795 = vst.msk [vmem:[%s1212_s21 + $0xf8] sm:$0xff] %vm763_vm2, %v1025_v30  ;;  %v1057_v31 = vpop.f32.mrb[30].mxu1  ;;  %v623_v32 = vpop.f32.mrb[31].mxu0 }
 0x121   : > { %827 = vst.msk [vmem:[%s1212_s21 + $0x1f8] sm:$0xff] %vm763_vm2, %v1057_v31  ;;  %793 = vst.msk [vmem:[%s1212_s21 + $0xe8] sm:$0xff] %vm763_vm2, %v623_v32  ;;  %v751_v33 = vpop.f32.mrb[31].mxu1 }
 0x122   : > { %825 = vst.msk [vmem:[%s1212_s21 + $0x1e8] sm:$0xff] %vm763_vm2, %v751_v33 }
 0x123 PF: > { %s12_s9 = sadd.s32 1, %s1108_s9  }
 0x124   : > { %p9_p4 = scmp.ge.s32.totalorder %s12_s9, 4  }
 0x126   :  { %11 = sbr.rel (!%p9_p4) target bundleno = 1 (0x1), region = 58 }

// kernel: decoder_forward.9
= control target key start
LH: loop header
LB: loop body
LE: loop exit
PB: predicated region body
PF: predicated region fallthrough
CT: control target
= control target key end

     0   :  { %s3621_s9 = smov 0   ;;  %s4417_s0 = inlined_call_operand.vmem [shape: bf16[4096,4], index: 0, kind: input, shape index: {}]   ;;  %s4418_s1 = inlined_call_operand.vmem [shape: bf16[4,16], index: 1, kind: input, shape index: {}]   ;;  %s4419_s2 = inlined_call_operand.vmem [shape: f32[4096,16], index: 2, kind: output, shape index: {}]  }
   0x1 LB: > { %s2804_s10 = sadd.s32 4294967295, %s3604_s9   ;;  %p2808_p0 = scmp.ge.s32.totalorder %s3604_s9, 1  ;;  %s3604_s9 = sphi %s3621_s9, %s12_s9  }
   0x2   : > { %p113_p1 = scmp.lt.s32.totalorder %s3604_s9, 3 }
   0x4   : > { %p114_p2 = pnand %p2808_p0, %p113_p1 }
   0x5   : > { %v404_v0 = vld [vmem:[%s4418_s1] sm:$0x3] (!%p114_p2)  ;;  %vm1430_vm0 = vcmask (!%p114_p2), 1041408   ;;  %s2809_s13 = sshll.u32 (!%p114_p2), %s2804_s10, 8  ;;  %vm1045_vm1 = vcmask (!%p114_p2), 31744   ;;  %vm2491_vm2 = vcmask (!%p114_p2), 130048  }
   0x6   : > { %117 = sbr.rel (%p114_p2) target bundleno = 483 (0x1e3), region = 28  ;;  %3460 = vmatprep.subr.msk.bf16.mxu0 (!%p114_p2), %vm1430_vm0, %v404_v0  ;;  %3461 = vmatprep.subr.msk.bf16.mxu1 (!%p114_p2), %vm1430_vm0, %v404_v0  ;;  %v1432_v1 = vsel (!%p114_p2), %vm1430_vm0, %v404_v0, 0  ;;  %p136_p3 = scmp.lt.s32.totalorder (!%p114_p2), %s2809_s13, 511 }
   0x7   : > { %3201 = vmatpush3.bf16.msra.mxu0 (!%p114_p2), %v1432_v1  ;;  %3459 = vmatpush3.bf16.msra.mxu1 (!%p114_p2), %v1432_v1 }
   0xd   : > { %s4421_s13 = smov (!%p136_p3, %s2809_s13), 511 }
   0xe   : > { %s2810_s14 = sshll.u32 %s4421_s13, 2  ;;  %s2812_s18 = sshll.u32 %s4421_s13, 3 }
   0xf   : > { %s3638_s17 = scalar_lea.vmem %s4417_s0, %s2810_s14  ;;  %s3862_s21 = scalar_lea.vmem %s4419_s2, %s2812_s18 }
  0x10   : > { %v3470_v2 = vld [vmem:[%s3638_s17] sm:$0xff]   ;;  %v3472_v4 = vld [vmem:[%s3638_s17 + $0x8] sm:$0xff]   ;;  %v3474_v6 = vld [vmem:[%s3638_s17 + $0x10] sm:$0xff]  }
  0x11   : > { %v3471_v3 = vld [vmem:[%s3638_s17 + $0x200] sm:$0xff]   ;;  %3202 = vmatprep.mubr.msk.bf16.mxu0 %vm1045_vm1, %v3470_v2  ;;  %v3473_v5 = vld [vmem:[%s3638_s17 + $0x208] sm:$0xff]   ;;  %v3475_v7 = vld [vmem:[%s3638_s17 + $0x210] sm:$0xff]  }
  0x12   : > { %3330 = vmatprep.mubr.msk.bf16.mxu1 %vm1045_vm1, %v3471_v3  ;;  %3203 = vmatmul.mubr.msk.bf16.vlgmr.msra.gmra.mrb[0].mxu0 %vm1045_vm1, %v3472_v4  ;;  %v3476_v8 = vld [vmem:[%s3638_s17 + $0x18] sm:$0xff]   ;;  %v3478_v10 = vld [vmem:[%s3638_s17 + $0x20] sm:$0xff]   ;;  %v3480_v12 = vld [vmem:[%s3638_s17 + $0x28] sm:$0xff]  }
  0x13   : > { %3331 = vmatmul.mubr.msk.bf16.vlgmr.msra.gmra.mrb[0].mxu1 %vm1045_vm1, %v3473_v5  ;;  %3206 = vmatprep.mubr.msk.bf16.mxu0 %vm1045_vm1, %v3474_v6  ;;  %v3477_v9 = vld [vmem:[%s3638_s17 + $0x218] sm:$0xff]   ;;  %v3479_v11 = vld [vmem:[%s3638_s17 + $0x220] sm:$0xff]   ;;  %v3481_v13 = vld [vmem:[%s3638_s17 + $0x228] sm:$0xff]  }
  0x14   : > { %3334 = vmatprep.mubr.msk.bf16.mxu1 %vm1045_vm1, %v3475_v7  ;;  %v3482_v14 = vld [vmem:[%s3638_s17 + $0x30] sm:$0xff]   ;;  %v3484_v16 = vld [vmem:[%s3638_s17 + $0x38] sm:$0xff]   ;;  %v3486_v18 = vld [vmem:[%s3638_s17 + $0x40] sm:$0xff]  }
  0x15   : > { %v3483_v15 = vld [vmem:[%s3638_s17 + $0x230] sm:$0xff]   ;;  %v3485_v17 = vld [vmem:[%s3638_s17 + $0x238] sm:$0xff]   ;;  %v3487_v19 = vld [vmem:[%s3638_s17 + $0x240] sm:$0xff]  }
  0x16   : > { %v3488_v20 = vld [vmem:[%s3638_s17 + $0x48] sm:$0xff]   ;;  %v3490_v22 = vld [vmem:[%s3638_s17 + $0x50] sm:$0xff]   ;;  %v3492_v24 = vld [vmem:[%s3638_s17 + $0x58] sm:$0xff]  }
  0x17   : > { %v3489_v21 = vld [vmem:[%s3638_s17 + $0x248] sm:$0xff]   ;;  %v3491_v23 = vld [vmem:[%s3638_s17 + $0x250] sm:$0xff]   ;;  %v3493_v25 = vld [vmem:[%s3638_s17 + $0x258] sm:$0xff]  }
  0x18   : > { %v3494_v26 = vld [vmem:[%s3638_s17 + $0x60] sm:$0xff]   ;;  %v3496_v28 = vld [vmem:[%s3638_s17 + $0x68] sm:$0xff]   ;;  %v3498_v30 = vld [vmem:[%s3638_s17 + $0x70] sm:$0xff]  }
  0x19   : > { %v3495_v27 = vld [vmem:[%s3638_s17 + $0x260] sm:$0xff]   ;;  %v3497_v29 = vld [vmem:[%s3638_s17 + $0x268] sm:$0xff]   ;;  %v3499_v31 = vld [vmem:[%s3638_s17 + $0x270] sm:$0xff]  }
  0x1a   : > { %3207 = vmatmul.mubr.msk.bf16.gmra.mrb[4].mxu0 %vm1045_vm1, %v3476_v8  ;;  %v3500_v32 = vld [vmem:[%s3638_s17 + $0x78] sm:$0xff]   ;;  %v3502_v34 = vld [vmem:[%s3638_s17 + $0x80] sm:$0xff]   ;;  %v3504_v36 = vld [vmem:[%s3638_s17 + $0x88] sm:$0xff]  }
  0x1b   : > { %3335 = vmatmul.mubr.msk.bf16.gmra.mrb[4].mxu1 %vm1045_vm1, %v3477_v9  ;;  %3210 = vmatprep.mubr.msk.bf16.mxu0 %vm1045_vm1, %v3478_v10  ;;  %v3501_v33 = vld [vmem:[%s3638_s17 + $0x278] sm:$0xff]   ;;  %v3503_v35 = vld [vmem:[%s3638_s17 + $0x280] sm:$0xff]   ;;  %v3505_v37 = vld [vmem:[%s3638_s17 + $0x288] sm:$0xff]  }
  0x1c   : > { %3338 = vmatprep.mubr.msk.bf16.mxu1 %vm1045_vm1, %v3479_v11  ;;  %v3506_v38 = vld [vmem:[%s3638_s17 + $0x90] sm:$0xff]   ;;  %v3508_v40 = vld [vmem:[%s3638_s17 + $0x98] sm:$0xff]   ;;  %v3510_v42 = vld [vmem:[%s3638_s17 + $0xa0] sm:$0xff]  }
  0x1d   : > { %v3507_v39 = vld [vmem:[%s3638_s17 + $0x290] sm:$0xff]   ;;  %v3509_v41 = vld [vmem:[%s3638_s17 + $0x298] sm:$0xff]   ;;  %v3511_v43 = vld [vmem:[%s3638_s17 + $0x2a0] sm:$0xff]  }
  0x1e   : > { %v3512_v44 = vld [vmem:[%s3638_s17 + $0xa8] sm:$0xff]   ;;  %v3514_v46 = vld [vmem:[%s3638_s17 + $0xb0] sm:$0xff]   ;;  %v3516_v48 = vld [vmem:[%s3638_s17 + $0xb8] sm:$0xff]  }
  0x1f   : > { %v3513_v45 = vld [vmem:[%s3638_s17 + $0x2a8] sm:$0xff]   ;;  %v3515_v47 = vld [vmem:[%s3638_s17 + $0x2b0] sm:$0xff]   ;;  %v3517_v49 = vld [vmem:[%s3638_s17 + $0x2b8] sm:$0xff]  }
  0x20   : > { %v3518_v50 = vld [vmem:[%s3638_s17 + $0xc0] sm:$0xff]   ;;  %v3520_v52 = vld [vmem:[%s3638_s17 + $0xc8] sm:$0xff]   ;;  %v3522_v54 = vld [vmem:[%s3638_s17 + $0xd0] sm:$0xff]  }
  0x21   : > { %v3519_v51 = vld [vmem:[%s3638_s17 + $0x2c0] sm:$0xff]   ;;  %v3521_v53 = vld [vmem:[%s3638_s17 + $0x2c8] sm:$0xff]   ;;  %v3523_v55 = vld [vmem:[%s3638_s17 + $0x2d0] sm:$0xff]  }
  0x22   : > { %3211 = vmatmul.mubr.msk.bf16.gmra.mrb[8].mxu0 %vm1045_vm1, %v3480_v12  ;;  %v3524_v56 = vld [vmem:[%s3638_s17 + $0xd8] sm:$0xff]   ;;  %v3526_v58 = vld [vmem:[%s3638_s17 + $0xe0] sm:$0xff]   ;;  %v3528_v60 = vld [vmem:[%s3638_s17 + $0xe8] sm:$0xff]  }
  0x23   : > { %3339 = vmatmul.mubr.msk.bf16.gmra.mrb[8].mxu1 %vm1045_vm1, %v3481_v13  ;;  %3214 = vmatprep.mubr.msk.bf16.mxu0 %vm1045_vm1, %v3482_v14  ;;  %v3525_v57 = vld [vmem:[%s3638_s17 + $0x2d8] sm:$0xff]   ;;  %v3527_v59 = vld [vmem:[%s3638_s17 + $0x2e0] sm:$0xff]   ;;  %v3529_v61 = vld [vmem:[%s3638_s17 + $0x2e8] sm:$0xff]  }
  0x24   : > { %3342 = vmatprep.mubr.msk.bf16.mxu1 %vm1045_vm1, %v3483_v15  ;;  %v3530_v62 = vld [vmem:[%s3638_s17 + $0xf0] sm:$0xff]   ;;  %v3532_v0 = vld [vmem:[%s3638_s17 + $0xf8] sm:$0xff]   ;;  %v3534_v2 = vld [vmem:[%s3638_s17 + $0x100] sm:$0xff]  }
  0x25   : > { %v3531_v63 = vld [vmem:[%s3638_s17 + $0x2f0] sm:$0xff]   ;;  %v3533_v1 = vld [vmem:[%s3638_s17 + $0x2f8] sm:$0xff]   ;;  %v3535_v3 = vld [vmem:[%s3638_s17 + $0x300] sm:$0xff]  }
  0x26   : > { %v3536_v4 = vld [vmem:[%s3638_s17 + $0x108] sm:$0xff]   ;;  %v3538_v6 = vld [vmem:[%s3638_s17 + $0x110] sm:$0xff]   ;;  %v3540_v8 = vld [vmem:[%s3638_s17 + $0x118] sm:$0xff]  }
  0x27   : > { %v3537_v5 = vld [vmem:[%s3638_s17 + $0x308] sm:$0xff]   ;;  %v3539_v7 = vld [vmem:[%s3638_s17 + $0x310] sm:$0xff]   ;;  %v3541_v9 = vld [vmem:[%s3638_s17 + $0x318] sm:$0xff]  }
  0x28   : > { %v3542_v10 = vld [vmem:[%s3638_s17 + $0x120] sm:$0xff]   ;;  %v3544_v12 = vld [vmem:[%s3638_s17 + $0x128] sm:$0xff]   ;;  %v3546_v14 = vld [vmem:[%s3638_s17 + $0x130] sm:$0xff]  }
  0x29   : > { %v3543_v11 = vld [vmem:[%s3638_s17 + $0x320] sm:$0xff]   ;;  %v3545_v13 = vld [vmem:[%s3638_s17 + $0x328] sm:$0xff]   ;;  %v3547_v15 = vld [vmem:[%s3638_s17 + $0x330] sm:$0xff]  }
  0x2a   : > { %3215 = vmatmul.mubr.msk.bf16.gmra.mrb[12].mxu0 %vm1045_vm1, %v3484_v16  ;;  %v3548_v16 = vld [vmem:[%s3638_s17 + $0x138] sm:$0xff]  }
  0x2b   : > { %3343 = vmatmul.mubr.msk.bf16.gmra.mrb[12].mxu1 %vm1045_vm1, %v3485_v17  ;;  %3218 = vmatprep.mubr.msk.bf16.mxu0 %vm1045_vm1, %v3486_v18  ;;  %v3549_v17 = vld [vmem:[%s3638_s17 + $0x338] sm:$0xff]   ;;  %v3550_v18 = vld [vmem:[%s3638_s17 + $0x140] sm:$0xff]  }
  0x2c   : > { %3346 = vmatprep.mubr.msk.bf16.mxu1 %vm1045_vm1, %v3487_v19  ;;  %v3551_v19 = vld [vmem:[%s3638_s17 + $0x340] sm:$0xff]  }
  0x32   : > { %3219 = vmatmul.mubr.msk.bf16.gmra.mrb[16].mxu0 %vm1045_vm1, %v3488_v20  ;;  %v3552_v20 = vld [vmem:[%s3638_s17 + $0x148] sm:$0xff]  }
  0x33   : > { %3347 = vmatmul.mubr.msk.bf16.gmra.mrb[16].mxu1 %vm1045_vm1, %v3489_v21  ;;  %3222 = vmatprep.mubr.msk.bf16.mxu0 %vm1045_vm1, %v3490_v22  ;;  %v3553_v21 = vld [vmem:[%s3638_s17 + $0x348] sm:$0xff]   ;;  %v3554_v22 = vld [vmem:[%s3638_s17 + $0x150] sm:$0xff]  }
  0x34   : > { %3350 = vmatprep.mubr.msk.bf16.mxu1 %vm1045_vm1, %v3491_v23  ;;  %v3555_v23 = vld [vmem:[%s3638_s17 + $0x350] sm:$0xff]  }
  0x3a   : > { %3223 = vmatmul.mubr.msk.bf16.gmra.mrb[20].mxu0 %vm1045_vm1, %v3492_v24  ;;  %v3556_v24 = vld [vmem:[%s3638_s17 + $0x158] sm:$0xff]  }
  0x3b   : > { %3351 = vmatmul.mubr.msk.bf16.gmra.mrb[20].mxu1 %vm1045_vm1, %v3493_v25  ;;  %3226 = vmatprep.mubr.msk.bf16.mxu0 %vm1045_vm1, %v3494_v26  ;;  %v3557_v25 = vld [vmem:[%s3638_s17 + $0x358] sm:$0xff]   ;;  %v3558_v26 = vld [vmem:[%s3638_s17 + $0x160] sm:$0xff]  }
  0x3c   : > { %3354 = vmatprep.mubr.msk.bf16.mxu1 %vm1045_vm1, %v3495_v27  ;;  %v3559_v27 = vld [vmem:[%s3638_s17 + $0x360] sm:$0xff]  }
  0x42   : > { %3227 = vmatmul.mubr.msk.bf16.gmra.mrb[24].mxu0 %vm1045_vm1, %v3496_v28  ;;  %v3560_v28 = vld [vmem:[%s3638_s17 + $0x168] sm:$0xff]  }
  0x43   : > { %3355 = vmatmul.mubr.msk.bf16.gmra.mrb[24].mxu1 %vm1045_vm1, %v3497_v29  ;;  %3230 = vmatprep.mubr.msk.bf16.mxu0 %vm1045_vm1, %v3498_v30  ;;  %v3561_v29 = vld [vmem:[%s3638_s17 + $0x368] sm:$0xff]   ;;  %v3562_v30 = vld [vmem:[%s3638_s17 + $0x170] sm:$0xff]  }
  0x44   : > { %3358 = vmatprep.mubr.msk.bf16.mxu1 %vm1045_vm1, %v3499_v31  ;;  %v3563_v31 = vld [vmem:[%s3638_s17 + $0x370] sm:$0xff]  }
  0x4a   : > { %3231 = vmatmul.mubr.msk.bf16.gmra.mrb[28].mxu0 %vm1045_vm1, %v3500_v32  ;;  %v3564_v32 = vld [vmem:[%s3638_s17 + $0x178] sm:$0xff]  }
  0x4b   : > { %3359 = vmatmul.mubr.msk.bf16.gmra.mrb[28].mxu1 %vm1045_vm1, %v3501_v33  ;;  %3234 = vmatprep.mubr.msk.bf16.mxu0 %vm1045_vm1, %v3502_v34  ;;  %v3565_v33 = vld [vmem:[%s3638_s17 + $0x378] sm:$0xff]   ;;  %v3566_v34 = vld [vmem:[%s3638_s17 + $0x180] sm:$0xff]  }
  0x4c   : > { %3362 = vmatprep.mubr.msk.bf16.mxu1 %vm1045_vm1, %v3503_v35  ;;  %v3567_v35 = vld [vmem:[%s3638_s17 + $0x380] sm:$0xff]  }
  0x52   : > { %3235 = vmatmul.mubr.msk.bf16.gmra.mrb[32].mxu0 %vm1045_vm1, %v3504_v36  ;;  %v3568_v36 = vld [vmem:[%s3638_s17 + $0x188] sm:$0xff]  }
  0x53   : > { %3363 = vmatmul.mubr.msk.bf16.gmra.mrb[32].mxu1 %vm1045_vm1, %v3505_v37  ;;  %3238 = vmatprep.mubr.msk.bf16.mxu0 %vm1045_vm1, %v3506_v38  ;;  %v3569_v37 = vld [vmem:[%s3638_s17 + $0x388] sm:$0xff]   ;;  %v3570_v38 = vld [vmem:[%s3638_s17 + $0x190] sm:$0xff]  }
  0x54   : > { %3366 = vmatprep.mubr.msk.bf16.mxu1 %vm1045_vm1, %v3507_v39  ;;  %v3571_v39 = vld [vmem:[%s3638_s17 + $0x390] sm:$0xff]  }
  0x5a   : > { %3239 = vmatmul.mubr.msk.bf16.gmra.mrb[36].mxu0 %vm1045_vm1, %v3508_v40  ;;  %v3572_v40 = vld [vmem:[%s3638_s17 + $0x198] sm:$0xff]  }
  0x5b   : > { %3367 = vmatmul.mubr.msk.bf16.gmra.mrb[36].mxu1 %vm1045_vm1, %v3509_v41  ;;  %3242 = vmatprep.mubr.msk.bf16.mxu0 %vm1045_vm1, %v3510_v42  ;;  %v3573_v41 = vld [vmem:[%s3638_s17 + $0x398] sm:$0xff]   ;;  %v3574_v42 = vld [vmem:[%s3638_s17 + $0x1a0] sm:$0xff]  }
  0x5c   : > { %3370 = vmatprep.mubr.msk.bf16.mxu1 %vm1045_vm1, %v3511_v43  ;;  %v3575_v43 = vld [vmem:[%s3638_s17 + $0x3a0] sm:$0xff]  }
  0x62   : > { %3243 = vmatmul.mubr.msk.bf16.gmra.mrb[40].mxu0 %vm1045_vm1, %v3512_v44  ;;  %v3576_v44 = vld [vmem:[%s3638_s17 + $0x1a8] sm:$0xff]  }
  0x63   : > { %3371 = vmatmul.mubr.msk.bf16.gmra.mrb[40].mxu1 %vm1045_vm1, %v3513_v45  ;;  %3246 = vmatprep.mubr.msk.bf16.mxu0 %vm1045_vm1, %v3514_v46  ;;  %v3577_v45 = vld [vmem:[%s3638_s17 + $0x3a8] sm:$0xff]   ;;  %v3578_v46 = vld [vmem:[%s3638_s17 + $0x1b0] sm:$0xff]  }
  0x64   : > { %3374 = vmatprep.mubr.msk.bf16.mxu1 %vm1045_vm1, %v3515_v47  ;;  %v3579_v47 = vld [vmem:[%s3638_s17 + $0x3b0] sm:$0xff]  }
  0x6a   : > { %3247 = vmatmul.mubr.msk.bf16.gmra.mrb[44].mxu0 %vm1045_vm1, %v3516_v48 }
  0x6b   : > { %3375 = vmatmul.mubr.msk.bf16.gmra.mrb[44].mxu1 %vm1045_vm1, %v3517_v49  ;;  %3250 = vmatprep.mubr.msk.bf16.mxu0 %vm1045_vm1, %v3518_v50 }
  0x6c   : > { %3378 = vmatprep.mubr.msk.bf16.mxu1 %vm1045_vm1, %v3519_v51  ;;  %v3580_v51 = vld [vmem:[%s3638_s17 + $0x1b8] sm:$0xff]  }
  0x72   : > { %3251 = vmatmul.mubr.msk.bf16.gmra.mrb[48].mxu0 %vm1045_vm1, %v3520_v52 }
  0x73   : > { %3379 = vmatmul.mubr.msk.bf16.gmra.mrb[48].mxu1 %vm1045_vm1, %v3521_v53  ;;  %3254 = vmatprep.mubr.msk.bf16.mxu0 %vm1045_vm1, %v3522_v54  ;;  %v3581_v54 = vld [vmem:[%s3638_s17 + $0x3b8] sm:$0xff]  }
  0x74   : > { %3382 = vmatprep.mubr.msk.bf16.mxu1 %vm1045_vm1, %v3523_v55  ;;  %v3582_v55 = vld [vmem:[%s3638_s17 + $0x1c0] sm:$0xff]  }
  0x7a   : > { %3255 = vmatmul.mubr.msk.bf16.gmra.mrb[52].mxu0 %vm1045_vm1, %v3524_v56 }
  0x7b   : > { %3383 = vmatmul.mubr.msk.bf16.gmra.mrb[52].mxu1 %vm1045_vm1, %v3525_v57  ;;  %3258 = vmatprep.mubr.msk.bf16.mxu0 %vm1045_vm1, %v3526_v58  ;;  %v3583_v58 = vld [vmem:[%s3638_s17 + $0x3c0] sm:$0xff]  }
  0x7c   : > { %3386 = vmatprep.mubr.msk.bf16.mxu1 %vm1045_vm1, %v3527_v59 }
  0x82   : > { %3259 = vmatmul.mubr.msk.bf16.gmra.mrb[56].mxu0 %vm1045_vm1, %v3528_v60 }
  0x83   : > { %3387 = vmatmul.mubr.msk.bf16.gmra.mrb[56].mxu1 %vm1045_vm1, %v3529_v61  ;;  %3262 = vmatprep.mubr.msk.bf16.mxu0 %vm1045_vm1, %v3530_v62 }
  0x84   : > { %3390 = vmatprep.mubr.msk.bf16.mxu1 %vm1045_vm1, %v3531_v63  ;;  %v3584_v63 = vld [vmem:[%s3638_s17 + $0x1c8] sm:$0xff]  }
  0x8a   : > { %3263 = vmatmul.mubr.msk.bf16.gmra.mrb[60].mxu0 %vm1045_vm1, %v3532_v0 }
  0x8b   : > { %3391 = vmatmul.mubr.msk.bf16.gmra.mrb[60].mxu1 %vm1045_vm1, %v3533_v1  ;;  %3266 = vmatprep.mubr.msk.bf16.mxu0 %vm1045_vm1, %v3534_v2  ;;  %v3585_v2 = vld [vmem:[%s3638_s17 + $0x3c8] sm:$0xff]  }
  0x8c   : > { %3394 = vmatprep.mubr.msk.bf16.mxu1 %vm1045_vm1, %v3535_v3  ;;  %v3586_v3 = vld [vmem:[%s3638_s17 + $0x1d0] sm:$0xff]  }
  0x92   : > { %3267 = vmatmul.mubr.msk.bf16.gmra.mrb[64].mxu0 %vm1045_vm1, %v3536_v4 }
  0x93   : > { %3395 = vmatmul.mubr.msk.bf16.gmra.mrb[64].mxu1 %vm1045_vm1, %v3537_v5  ;;  %3270 = vmatprep.mubr.msk.bf16.mxu0 %vm1045_vm1, %v3538_v6  ;;  %v3587_v6 = vld [vmem:[%s3638_s17 + $0x3d0] sm:$0xff]  }
  0x94   : > { %3398 = vmatprep.mubr.msk.bf16.mxu1 %vm1045_vm1, %v3539_v7 }
  0x9a   : > { %3271 = vmatmul.mubr.msk.bf16.gmra.mrb[68].mxu0 %vm1045_vm1, %v3540_v8 }
  0x9b   : > { %3399 = vmatmul.mubr.msk.bf16.gmra.mrb[68].mxu1 %vm1045_vm1, %v3541_v9  ;;  %3274 = vmatprep.mubr.msk.bf16.mxu0 %vm1045_vm1, %v3542_v10 }
  0x9c   : > { %3402 = vmatprep.mubr.msk.bf16.mxu1 %vm1045_vm1, %v3543_v11  ;;  %v3588_v11 = vld [vmem:[%s3638_s17 + $0x1d8] sm:$0xff]  }
  0xa2   : > { %3275 = vmatmul.mubr.msk.bf16.gmra.mrb[72].mxu0 %vm1045_vm1, %v3544_v12 }
  0xa3   : > { %3403 = vmatmul.mubr.msk.bf16.gmra.mrb[72].mxu1 %vm1045_vm1, %v3545_v13  ;;  %3278 = vmatprep.mubr.msk.bf16.mxu0 %vm1045_vm1, %v3546_v14  ;;  %v3589_v14 = vld [vmem:[%s3638_s17 + $0x3d8] sm:$0xff]  }
  0xa4   : > { %3406 = vmatprep.mubr.msk.bf16.mxu1 %vm1045_vm1, %v3547_v15  ;;  %v3590_v15 = vld [vmem:[%s3638_s17 + $0x1e0] sm:$0xff]  }
  0xaa   : > { %3279 = vmatmul.mubr.msk.bf16.gmra.mrb[76].mxu0 %vm1045_vm1, %v3548_v16 }
  0xab   : > { %3407 = vmatmul.mubr.msk.bf16.gmra.mrb[76].mxu1 %vm1045_vm1, %v3549_v17  ;;  %3282 = vmatprep.mubr.msk.bf16.mxu0 %vm1045_vm1, %v3550_v18  ;;  %v3591_v18 = vld [vmem:[%s3638_s17 + $0x3e0] sm:$0xff]  }
  0xac   : > { %3410 = vmatprep.mubr.msk.bf16.mxu1 %vm1045_vm1, %v3551_v19 }
  0xb2   : > { %3283 = vmatmul.mubr.msk.bf16.gmra.mrb[80].mxu0 %vm1045_vm1, %v3552_v20 }
  0xb3   : > { %3411 = vmatmul.mubr.msk.bf16.gmra.mrb[80].mxu1 %vm1045_vm1, %v3553_v21  ;;  %3286 = vmatprep.mubr.msk.bf16.mxu0 %vm1045_vm1, %v3554_v22 }
  0xb4   : > { %3414 = vmatprep.mubr.msk.bf16.mxu1 %vm1045_vm1, %v3555_v23  ;;  %v3592_v23 = vld [vmem:[%s3638_s17 + $0x1e8] sm:$0xff]  }
  0xba   : > { %3287 = vmatmul.mubr.msk.bf16.gmra.mrb[84].mxu0 %vm1045_vm1, %v3556_v24 }
  0xbb   : > { %3415 = vmatmul.mubr.msk.bf16.gmra.mrb[84].mxu1 %vm1045_vm1, %v3557_v25  ;;  %3290 = vmatprep.mubr.msk.bf16.mxu0 %vm1045_vm1, %v3558_v26  ;;  %v3593_v26 = vld [vmem:[%s3638_s17 + $0x3e8] sm:$0xff]  }
  0xbc   : > { %3418 = vmatprep.mubr.msk.bf16.mxu1 %vm1045_vm1, %v3559_v27  ;;  %v3594_v27 = vld [vmem:[%s3638_s17 + $0x1f0] sm:$0xff]  }
  0xc2   : > { %3291 = vmatmul.mubr.msk.bf16.gmra.mrb[88].mxu0 %vm1045_vm1, %v3560_v28 }
  0xc3   : > { %3419 = vmatmul.mubr.msk.bf16.gmra.mrb[88].mxu1 %vm1045_vm1, %v3561_v29  ;;  %3294 = vmatprep.mubr.msk.bf16.mxu0 %vm1045_vm1, %v3562_v30  ;;  %v3595_v30 = vld [vmem:[%s3638_s17 + $0x3f0] sm:$0xff]  }
  0xc4   : > { %3422 = vmatprep.mubr.msk.bf16.mxu1 %vm1045_vm1, %v3563_v31 }
  0xca   : > { %3295 = vmatmul.mubr.msk.bf16.gmra.mrb[92].mxu0 %vm1045_vm1, %v3564_v32 }
  0xcb   : > { %3423 = vmatmul.mubr.msk.bf16.gmra.mrb[92].mxu1 %vm1045_vm1, %v3565_v33  ;;  %3298 = vmatprep.mubr.msk.bf16.mxu0 %vm1045_vm1, %v3566_v34 }
  0xcc   : > { %3426 = vmatprep.mubr.msk.bf16.mxu1 %vm1045_vm1, %v3567_v35  ;;  %v3596_v35 = vld [vmem:[%s3638_s17 + $0x1f8] sm:$0xff]  }
  0xd2   : > { %3299 = vmatmul.mubr.msk.bf16.gmra.mrb[96].mxu0 %vm1045_vm1, %v3568_v36 }
  0xd3   : > { %3427 = vmatmul.mubr.msk.bf16.gmra.mrb[96].mxu1 %vm1045_vm1, %v3569_v37  ;;  %3302 = vmatprep.mubr.msk.bf16.mxu0 %vm1045_vm1, %v3570_v38  ;;  %v3597_v38 = vld [vmem:[%s3638_s17 + $0x3f8] sm:$0xff]  }
  0xd4   : > { %3430 = vmatprep.mubr.msk.bf16.mxu1 %vm1045_vm1, %v3571_v39 }
  0xda   : > { %3303 = vmatmul.mubr.msk.bf16.gmra.mrb[100].mxu0 %vm1045_vm1, %v3572_v40 }
  0xdb   : > { %3431 = vmatmul.mubr.msk.bf16.gmra.mrb[100].mxu1 %vm1045_vm1, %v3573_v41  ;;  %3306 = vmatprep.mubr.msk.bf16.mxu0 %vm1045_vm1, %v3574_v42 }
  0xdc   : > { %3434 = vmatprep.mubr.msk.bf16.mxu1 %vm1045_vm1, %v3575_v43 }
  0xe2   : > { %3307 = vmatmul.mubr.msk.bf16.gmra.mrb[104].mxu0 %vm1045_vm1, %v3576_v44 }
  0xe3   : > { %3435 = vmatmul.mubr.msk.bf16.gmra.mrb[104].mxu1 %vm1045_vm1, %v3577_v45  ;;  %3310 = vmatprep.mubr.msk.bf16.mxu0 %vm1045_vm1, %v3578_v46 }
  0xe4   : > { %3438 = vmatprep.mubr.msk.bf16.mxu1 %vm1045_vm1, %v3579_v47 }
  0xe5   : > { %v3204_v48 = vpop.f32.mrb[0].mxu0 }
  0xe6   : > { %2494 = vst.msk [vmem:[%s3862_s21 + $0x10] sm:$0xff] %vm2491_vm2, %v3204_v48  ;;  %v3332_v49 = vpop.f32.mrb[0].mxu1  ;;  %v1468_v50 = vpop.f32.mrb[1].mxu0 }
  0xe7   : > { %2622 = vst.msk [vmem:[%s3862_s21 + $0x410] sm:$0xff] %vm2491_vm2, %v3332_v49  ;;  %2492 = vst.msk [vmem:[%s3862_s21] sm:$0xff] %vm2491_vm2, %v1468_v50  ;;  %v1980_v52 = vpop.f32.mrb[1].mxu1  ;;  %v3205_v53 = vpop.f32.mrb[2].mxu0 }
  0xe8   : > { %2620 = vst.msk [vmem:[%s3862_s21 + $0x400] sm:$0xff] %vm2491_vm2, %v1980_v52  ;;  %2495 = vst.msk [vmem:[%s3862_s21 + $0x18] sm:$0xff] %vm2491_vm2, %v3205_v53  ;;  %v3333_v56 = vpop.f32.mrb[2].mxu1  ;;  %v1471_v57 = vpop.f32.mrb[3].mxu0 }
  0xe9   : > { %2623 = vst.msk [vmem:[%s3862_s21 + $0x418] sm:$0xff] %vm2491_vm2, %v3333_v56  ;;  %2493 = vst.msk [vmem:[%s3862_s21 + $0x8] sm:$0xff] %vm2491_vm2, %v1471_v57  ;;  %v1983_v59 = vpop.f32.mrb[3].mxu1 }
  0xea   : > { %2621 = vst.msk [vmem:[%s3862_s21 + $0x408] sm:$0xff] %vm2491_vm2, %v1983_v59  ;;  %3311 = vmatmul.mubr.msk.bf16.gmra.mrb[108].mxu0 %vm1045_vm1, %v3580_v51 }
  0xeb   : > { %3439 = vmatmul.mubr.msk.bf16.gmra.mrb[108].mxu1 %vm1045_vm1, %v3581_v54  ;;  %3314 = vmatprep.mubr.msk.bf16.mxu0 %vm1045_vm1, %v3582_v55 }
  0xec   : > { %3442 = vmatprep.mubr.msk.bf16.mxu1 %vm1045_vm1, %v3583_v58 }
  0xed   : > { %v3208_v60 = vpop.f32.mrb[4].mxu0 }
  0xee   : > { %2498 = vst.msk [vmem:[%s3862_s21 + $0x30] sm:$0xff] %vm2491_vm2, %v3208_v60  ;;  %v3336_v61 = vpop.f32.mrb[4].mxu1  ;;  %v1484_v62 = vpop.f32.mrb[5].mxu0 }
  0xef   : > { %2626 = vst.msk [vmem:[%s3862_s21 + $0x430] sm:$0xff] %vm2491_vm2, %v3336_v61  ;;  %2496 = vst.msk [vmem:[%s3862_s21 + $0x20] sm:$0xff] %vm2491_vm2, %v1484_v62  ;;  %v1996_v0 = vpop.f32.mrb[5].mxu1  ;;  %v3209_v1 = vpop.f32.mrb[6].mxu0 }
  0xf0   : > { %2624 = vst.msk [vmem:[%s3862_s21 + $0x420] sm:$0xff] %vm2491_vm2, %v1996_v0  ;;  %2499 = vst.msk [vmem:[%s3862_s21 + $0x38] sm:$0xff] %vm2491_vm2, %v3209_v1  ;;  %v3337_v4 = vpop.f32.mrb[6].mxu1  ;;  %v1487_v5 = vpop.f32.mrb[7].mxu0 }
  0xf1   : > { %2627 = vst.msk [vmem:[%s3862_s21 + $0x438] sm:$0xff] %vm2491_vm2, %v3337_v4  ;;  %2497 = vst.msk [vmem:[%s3862_s21 + $0x28] sm:$0xff] %vm2491_vm2, %v1487_v5  ;;  %v1999_v7 = vpop.f32.mrb[7].mxu1 }
  0xf2   : > { %2625 = vst.msk [vmem:[%s3862_s21 + $0x428] sm:$0xff] %vm2491_vm2, %v1999_v7  ;;  %3315 = vmatmul.mubr.msk.bf16.gmra.mrb[112].mxu0 %vm1045_vm1, %v3584_v63 }
  0xf3   : > { %3443 = vmatmul.mubr.msk.bf16.gmra.mrb[112].mxu1 %vm1045_vm1, %v3585_v2  ;;  %3318 = vmatprep.mubr.msk.bf16.mxu0 %vm1045_vm1, %v3586_v3 }
  0xf4   : > { %3446 = vmatprep.mubr.msk.bf16.mxu1 %vm1045_vm1, %v3587_v6 }
  0xf5   : > { %v3212_v8 = vpop.f32.mrb[8].mxu0 }
  0xf6   : > { %2502 = vst.msk [vmem:[%s3862_s21 + $0x50] sm:$0xff] %vm2491_vm2, %v3212_v8  ;;  %v3340_v9 = vpop.f32.mrb[8].mxu1  ;;  %v1500_v10 = vpop.f32.mrb[9].mxu0 }
  0xf7   : > { %2630 = vst.msk [vmem:[%s3862_s21 + $0x450] sm:$0xff] %vm2491_vm2, %v3340_v9  ;;  %2500 = vst.msk [vmem:[%s3862_s21 + $0x40] sm:$0xff] %vm2491_vm2, %v1500_v10  ;;  %v2012_v12 = vpop.f32.mrb[9].mxu1  ;;  %v3213_v13 = vpop.f32.mrb[10].mxu0 }
  0xf8   : > { %2628 = vst.msk [vmem:[%s3862_s21 + $0x440] sm:$0xff] %vm2491_vm2, %v2012_v12  ;;  %2503 = vst.msk [vmem:[%s3862_s21 + $0x58] sm:$0xff] %vm2491_vm2, %v3213_v13  ;;  %v3341_v16 = vpop.f32.mrb[10].mxu1  ;;  %v1503_v17 = vpop.f32.mrb[11].mxu0 }
  0xf9   : > { %2631 = vst.msk [vmem:[%s3862_s21 + $0x458] sm:$0xff] %vm2491_vm2, %v3341_v16  ;;  %2501 = vst.msk [vmem:[%s3862_s21 + $0x48] sm:$0xff] %vm2491_vm2, %v1503_v17  ;;  %v2015_v19 = vpop.f32.mrb[11].mxu1 }
  0xfa   : > { %2629 = vst.msk [vmem:[%s3862_s21 + $0x448] sm:$0xff] %vm2491_vm2, %v2015_v19  ;;  %3319 = vmatmul.mubr.msk.bf16.gmra.mrb[116].mxu0 %vm1045_vm1, %v3588_v11 }
  0xfb   : > { %3447 = vmatmul.mubr.msk.bf16.gmra.mrb[116].mxu1 %vm1045_vm1, %v3589_v14  ;;  %3322 = vmatprep.mubr.msk.bf16.mxu0 %vm1045_vm1, %v3590_v15 }
  0xfc   : > { %3450 = vmatprep.mubr.msk.bf16.mxu1 %vm1045_vm1, %v3591_v18 }
  0xfd   : > { %v3216_v20 = vpop.f32.mrb[12].mxu0 }
  0xfe   : > { %2506 = vst.msk [vmem:[%s3862_s21 + $0x70] sm:$0xff] %vm2491_vm2, %v3216_v20  ;;  %v3344_v21 = vpop.f32.mrb[12].mxu1  ;;  %v1516_v22 = vpop.f32.mrb[13].mxu0 }
  0xff   : > { %2634 = vst.msk [vmem:[%s3862_s21 + $0x470] sm:$0xff] %vm2491_vm2, %v3344_v21  ;;  %2504 = vst.msk [vmem:[%s3862_s21 + $0x60] sm:$0xff] %vm2491_vm2, %v1516_v22  ;;  %v2028_v24 = vpop.f32.mrb[13].mxu1  ;;  %v3217_v25 = vpop.f32.mrb[14].mxu0 }
 0x100   : > { %2632 = vst.msk [vmem:[%s3862_s21 + $0x460] sm:$0xff] %vm2491_vm2, %v2028_v24  ;;  %2507 = vst.msk [vmem:[%s3862_s21 + $0x78] sm:$0xff] %vm2491_vm2, %v3217_v25  ;;  %v3345_v28 = vpop.f32.mrb[14].mxu1  ;;  %v1519_v29 = vpop.f32.mrb[15].mxu0 }
 0x101   : > { %2635 = vst.msk [vmem:[%s3862_s21 + $0x478] sm:$0xff] %vm2491_vm2, %v3345_v28  ;;  %2505 = vst.msk [vmem:[%s3862_s21 + $0x68] sm:$0xff] %vm2491_vm2, %v1519_v29  ;;  %v2031_v31 = vpop.f32.mrb[15].mxu1 }
 0x102   : > { %2633 = vst.msk [vmem:[%s3862_s21 + $0x468] sm:$0xff] %vm2491_vm2, %v2031_v31  ;;  %3323 = vmatmul.mubr.msk.bf16.gmra.mrb[120].mxu0 %vm1045_vm1, %v3592_v23 }
 0x103   : > { %3451 = vmatmul.mubr.msk.bf16.gmra.mrb[120].mxu1 %vm1045_vm1, %v3593_v26  ;;  %3326 = vmatprep.mubr.msk.bf16.mxu0 %vm1045_vm1, %v3594_v27 }
 0x104   : > { %3454 = vmatprep.mubr.msk.bf16.mxu1 %vm1045_vm1, %v3595_v30 }
 0x105   : > { %v3220_v32 = vpop.f32.mrb[16].mxu0 }
 0x106   : > { %2510 = vst.msk [vmem:[%s3862_s21 + $0x90] sm:$0xff] %vm2491_vm2, %v3220_v32  ;;  %v3348_v33 = vpop.f32.mrb[16].mxu1  ;;  %v1532_v34 = vpop.f32.mrb[17].mxu0 }
 0x107   : > { %2638 = vst.msk [vmem:[%s3862_s21 + $0x490] sm:$0xff] %vm2491_vm2, %v3348_v33  ;;  %2508 = vst.msk [vmem:[%s3862_s21 + $0x80] sm:$0xff] %vm2491_vm2, %v1532_v34  ;;  %v2044_v36 = vpop.f32.mrb[17].mxu1  ;;  %v3221_v37 = vpop.f32.mrb[18].mxu0 }
 0x108   : > { %2636 = vst.msk [vmem:[%s3862_s21 + $0x480] sm:$0xff] %vm2491_vm2, %v2044_v36  ;;  %2511 = vst.msk [vmem:[%s3862_s21 + $0x98] sm:$0xff] %vm2491_vm2, %v3221_v37  ;;  %v3349_v39 = vpop.f32.mrb[18].mxu1  ;;  %v1535_v40 = vpop.f32.mrb[19].mxu0 }
 0x109   : > { %2639 = vst.msk [vmem:[%s3862_s21 + $0x498] sm:$0xff] %vm2491_vm2, %v3349_v39  ;;  %2509 = vst.msk [vmem:[%s3862_s21 + $0x88] sm:$0xff] %vm2491_vm2, %v1535_v40  ;;  %v2047_v41 = vpop.f32.mrb[19].mxu1 }
 0x10a   : > { %2637 = vst.msk [vmem:[%s3862_s21 + $0x488] sm:$0xff] %vm2491_vm2, %v2047_v41  ;;  %3327 = vmatmul.mubr.msk.bf16.gmra.mrb[124].mxu0 %vm1045_vm1, %v3596_v35 }
 0x10b   : > { %3455 = vmatmul.mubr.msk.bf16.gmra.mrb[124].mxu1 %vm1045_vm1, %v3597_v38 }
 0x10d   : > { %v3224_v42 = vpop.f32.mrb[20].mxu0 }
 0x10e   : > { %2514 = vst.msk [vmem:[%s3862_s21 + $0xb0] sm:$0xff] %vm2491_vm2, %v3224_v42  ;;  %v3352_v43 = vpop.f32.mrb[20].mxu1  ;;  %v1548_v44 = vpop.f32.mrb[21].mxu0 }
 0x10f   : > { %2642 = vst.msk [vmem:[%s3862_s21 + $0x4b0] sm:$0xff] %vm2491_vm2, %v3352_v43  ;;  %2512 = vst.msk [vmem:[%s3862_s21 + $0xa0] sm:$0xff] %vm2491_vm2, %v1548_v44  ;;  %v2060_v45 = vpop.f32.mrb[21].mxu1  ;;  %v3225_v46 = vpop.f32.mrb[22].mxu0 }
 0x110   : > { %2640 = vst.msk [vmem:[%s3862_s21 + $0x4a0] sm:$0xff] %vm2491_vm2, %v2060_v45  ;;  %2515 = vst.msk [vmem:[%s3862_s21 + $0xb8] sm:$0xff] %vm2491_vm2, %v3225_v46  ;;  %v3353_v47 = vpop.f32.mrb[22].mxu1  ;;  %v1551_v48 = vpop.f32.mrb[23].mxu0 }
 0x111   : > { %2643 = vst.msk [vmem:[%s3862_s21 + $0x4b8] sm:$0xff] %vm2491_vm2, %v3353_v47  ;;  %2513 = vst.msk [vmem:[%s3862_s21 + $0xa8] sm:$0xff] %vm2491_vm2, %v1551_v48  ;;  %v2063_v49 = vpop.f32.mrb[23].mxu1 }
 0x112   : > { %2641 = vst.msk [vmem:[%s3862_s21 + $0x4a8] sm:$0xff] %vm2491_vm2, %v2063_v49 }
 0x115   : > { %v3228_v50 = vpop.f32.mrb[24].mxu0 }
 0x116   : > { %2518 = vst.msk [vmem:[%s3862_s21 + $0xd0] sm:$0xff] %vm2491_vm2, %v3228_v50  ;;  %v3356_v51 = vpop.f32.mrb[24].mxu1  ;;  %v1564_v52 = vpop.f32.mrb[25].mxu0 }
 0x117   : > { %2646 = vst.msk [vmem:[%s3862_s21 + $0x4d0] sm:$0xff] %vm2491_vm2, %v3356_v51  ;;  %2516 = vst.msk [vmem:[%s3862_s21 + $0xc0] sm:$0xff] %vm2491_vm2, %v1564_v52  ;;  %v2076_v53 = vpop.f32.mrb[25].mxu1  ;;  %v3229_v54 = vpop.f32.mrb[26].mxu0 }
 0x118   : > { %2644 = vst.msk [vmem:[%s3862_s21 + $0x4c0] sm:$0xff] %vm2491_vm2, %v2076_v53  ;;  %2519 = vst.msk [vmem:[%s3862_s21 + $0xd8] sm:$0xff] %vm2491_vm2, %v3229_v54  ;;  %v3357_v55 = vpop.f32.mrb[26].mxu1  ;;  %v1567_v56 = vpop.f32.mrb[27].mxu0 }
 0x119   : > { %2647 = vst.msk [vmem:[%s3862_s21 + $0x4d8] sm:$0xff] %vm2491_vm2, %v3357_v55  ;;  %2517 = vst.msk [vmem:[%s3862_s21 + $0xc8] sm:$0xff] %vm2491_vm2, %v1567_v56  ;;  %v2079_v57 = vpop.f32.mrb[27].mxu1 }
 0x11a   : > { %2645 = vst.msk [vmem:[%s3862_s21 + $0x4c8] sm:$0xff] %vm2491_vm2, %v2079_v57 }
 0x11d   : > { %v3232_v58 = vpop.f32.mrb[28].mxu0 }
 0x11e   : > { %2522 = vst.msk [vmem:[%s3862_s21 + $0xf0] sm:$0xff] %vm2491_vm2, %v3232_v58  ;;  %v3360_v59 = vpop.f32.mrb[28].mxu1  ;;  %v1580_v60 = vpop.f32.mrb[29].mxu0 }
 0x11f   : > { %2650 = vst.msk [vmem:[%s3862_s21 + $0x4f0] sm:$0xff] %vm2491_vm2, %v3360_v59  ;;  %2520 = vst.msk [vmem:[%s3862_s21 + $0xe0] sm:$0xff] %vm2491_vm2, %v1580_v60  ;;  %v2092_v61 = vpop.f32.mrb[29].mxu1  ;;  %v3233_v62 = vpop.f32.mrb[30].mxu0 }
 0x120   : > { %2648 = vst.msk [vmem:[%s3862_s21 + $0x4e0] sm:$0xff] %vm2491_vm2, %v2092_v61  ;;  %2523 = vst.msk [vmem:[%s3862_s21 + $0xf8] sm:$0xff] %vm2491_vm2, %v3233_v62  ;;  %v3361_v63 = vpop.f32.mrb[30].mxu1  ;;  %v1583_v0 = vpop.f32.mrb[31].mxu0 }
 0x121   : > { %2651 = vst.msk [vmem:[%s3862_s21 + $0x4f8] sm:$0xff] %vm2491_vm2, %v3361_v63  ;;  %2521 = vst.msk [vmem:[%s3862_s21 + $0xe8] sm:$0xff] %vm2491_vm2, %v1583_v0  ;;  %v2095_v1 = vpop.f32.mrb[31].mxu1 }
 0x122   : > { %2649 = vst.msk [vmem:[%s3862_s21 + $0x4e8] sm:$0xff] %vm2491_vm2, %v2095_v1 }
 0x125   : > { %v3236_v2 = vpop.f32.mrb[32].mxu0 }
 0x126   : > { %2526 = vst.msk [vmem:[%s3862_s21 + $0x110] sm:$0xff] %vm2491_vm2, %v3236_v2  ;;  %v3364_v3 = vpop.f32.mrb[32].mxu1  ;;  %v1596_v4 = vpop.f32.mrb[33].mxu0 }
 0x127   : > { %2654 = vst.msk [vmem:[%s3862_s21 + $0x510] sm:$0xff] %vm2491_vm2, %v3364_v3  ;;  %2524 = vst.msk [vmem:[%s3862_s21 + $0x100] sm:$0xff] %vm2491_vm2, %v1596_v4  ;;  %v2108_v5 = vpop.f32.mrb[33].mxu1  ;;  %v3237_v6 = vpop.f32.mrb[34].mxu0 }
 0x128   : > { %2652 = vst.msk [vmem:[%s3862_s21 + $0x500] sm:$0xff] %vm2491_vm2, %v2108_v5  ;;  %2527 = vst.msk [vmem:[%s3862_s21 + $0x118] sm:$0xff] %vm2491_vm2, %v3237_v6  ;;  %v3365_v7 = vpop.f32.mrb[34].mxu1  ;;  %v1599_v8 = vpop.f32.mrb[35].mxu0 }
 0x129   : > { %2655 = vst.msk [vmem:[%s3862_s21 + $0x518] sm:$0xff] %vm2491_vm2, %v3365_v7  ;;  %2525 = vst.msk [vmem:[%s3862_s21 + $0x108] sm:$0xff] %vm2491_vm2, %v1599_v8  ;;  %v2111_v9 = vpop.f32.mrb[35].mxu1 }
 0x12a   : > { %2653 = vst.msk [vmem:[%s3862_s21 + $0x508] sm:$0xff] %vm2491_vm2, %v2111_v9 }
 0x12d   : > { %v3240_v10 = vpop.f32.mrb[36].mxu0 }
 0x12e   : > { %2530 = vst.msk [vmem:[%s3862_s21 + $0x130] sm:$0xff] %vm2491_vm2, %v3240_v10  ;;  %v3368_v11 = vpop.f32.mrb[36].mxu1  ;;  %v1612_v12 = vpop.f32.mrb[37].mxu0 }
 0x12f   : > { %2658 = vst.msk [vmem:[%s3862_s21 + $0x530] sm:$0xff] %vm2491_vm2, %v3368_v11  ;;  %2528 = vst.msk [vmem:[%s3862_s21 + $0x120] sm:$0xff] %vm2491_vm2, %v1612_v12  ;;  %v2124_v13 = vpop.f32.mrb[37].mxu1  ;;  %v3241_v14 = vpop.f32.mrb[38].mxu0 }
 0x130   : > { %2656 = vst.msk [vmem:[%s3862_s21 + $0x520] sm:$0xff] %vm2491_vm2, %v2124_v13  ;;  %2531 = vst.msk [vmem:[%s3862_s21 + $0x138] sm:$0xff] %vm2491_vm2, %v3241_v14  ;;  %v3369_v15 = vpop.f32.mrb[38].mxu1  ;;  %v1615_v16 = vpop.f32.mrb[39].mxu0 }
 0x131   : > { %2659 = vst.msk [vmem:[%s3862_s21 + $0x538] sm:$0xff] %vm2491_vm2, %v3369_v15  ;;  %2529 = vst.msk [vmem:[%s3862_s21 + $0x128] sm:$0xff] %vm2491_vm2, %v1615_v16  ;;  %v2127_v17 = vpop.f32.mrb[39].mxu1 }
 0x132   : > { %2657 = vst.msk [vmem:[%s3862_s21 + $0x528] sm:$0xff] %vm2491_vm2, %v2127_v17 }
 0x135   : > { %v3244_v18 = vpop.f32.mrb[40].mxu0 }
 0x136   : > { %2534 = vst.msk [vmem:[%s3862_s21 + $0x150] sm:$0xff] %vm2491_vm2, %v3244_v18  ;;  %v3372_v19 = vpop.f32.mrb[40].mxu1  ;;  %v1628_v20 = vpop.f32.mrb[41].mxu0 }
 0x137   : > { %2662 = vst.msk [vmem:[%s3862_s21 + $0x550] sm:$0xff] %vm2491_vm2, %v3372_v19  ;;  %2532 = vst.msk [vmem:[%s3862_s21 + $0x140] sm:$0xff] %vm2491_vm2, %v1628_v20  ;;  %v2140_v21 = vpop.f32.mrb[41].mxu1  ;;  %v3245_v22 = vpop.f32.mrb[42].mxu0 }
 0x138   : > { %2660 = vst.msk [vmem:[%s3862_s21 + $0x540] sm:$0xff] %vm2491_vm2, %v2140_v21  ;;  %2535 = vst.msk [vmem:[%s3862_s21 + $0x158] sm:$0xff] %vm2491_vm2, %v3245_v22  ;;  %v3373_v23 = vpop.f32.mrb[42].mxu1  ;;  %v1631_v24 = vpop.f32.mrb[43].mxu0 }
 0x139   : > { %2663 = vst.msk [vmem:[%s3862_s21 + $0x558] sm:$0xff] %vm2491_vm2, %v3373_v23  ;;  %2533 = vst.msk [vmem:[%s3862_s21 + $0x148] sm:$0xff] %vm2491_vm2, %v1631_v24  ;;  %v2143_v25 = vpop.f32.mrb[43].mxu1 }
 0x13a   : > { %2661 = vst.msk [vmem:[%s3862_s21 + $0x548] sm:$0xff] %vm2491_vm2, %v2143_v25 }
 0x13d   : > { %v3248_v26 = vpop.f32.mrb[44].mxu0 }
 0x13e   : > { %2538 = vst.msk [vmem:[%s3862_s21 + $0x170] sm:$0xff] %vm2491_vm2, %v3248_v26  ;;  %v3376_v27 = vpop.f32.mrb[44].mxu1  ;;  %v1644_v28 = vpop.f32.mrb[45].mxu0 }
 0x13f   : > { %2666 = vst.msk [vmem:[%s3862_s21 + $0x570] sm:$0xff] %vm2491_vm2, %v3376_v27  ;;  %2536 = vst.msk [vmem:[%s3862_s21 + $0x160] sm:$0xff] %vm2491_vm2, %v1644_v28  ;;  %v2156_v29 = vpop.f32.mrb[45].mxu1  ;;  %v3249_v30 = vpop.f32.mrb[46].mxu0 }
 0x140   : > { %2664 = vst.msk [vmem:[%s3862_s21 + $0x560] sm:$0xff] %vm2491_vm2, %v2156_v29  ;;  %2539 = vst.msk [vmem:[%s3862_s21 + $0x178] sm:$0xff] %vm2491_vm2, %v3249_v30  ;;  %v3377_v31 = vpop.f32.mrb[46].mxu1  ;;  %v1647_v32 = vpop.f32.mrb[47].mxu0 }
 0x141   : > { %2667 = vst.msk [vmem:[%s3862_s21 + $0x578] sm:$0xff] %vm2491_vm2, %v3377_v31  ;;  %2537 = vst.msk [vmem:[%s3862_s21 + $0x168] sm:$0xff] %vm2491_vm2, %v1647_v32  ;;  %v2159_v33 = vpop.f32.mrb[47].mxu1 }
 0x142   : > { %2665 = vst.msk [vmem:[%s3862_s21 + $0x568] sm:$0xff] %vm2491_vm2, %v2159_v33 }
 0x145   : > { %v3252_v34 = vpop.f32.mrb[48].mxu0 }
 0x146   : > { %2542 = vst.msk [vmem:[%s3862_s21 + $0x190] sm:$0xff] %vm2491_vm2, %v3252_v34  ;;  %v3380_v35 = vpop.f32.mrb[48].mxu1  ;;  %v1660_v36 = vpop.f32.mrb[49].mxu0 }
 0x147   : > { %2670 = vst.msk [vmem:[%s3862_s21 + $0x590] sm:$0xff] %vm2491_vm2, %v3380_v35  ;;  %2540 = vst.msk [vmem:[%s3862_s21 + $0x180] sm:$0xff] %vm2491_vm2, %v1660_v36  ;;  %v2172_v37 = vpop.f32.mrb[49].mxu1  ;;  %v3253_v38 = vpop.f32.mrb[50].mxu0 }
 0x148   : > { %2668 = vst.msk [vmem:[%s3862_s21 + $0x580] sm:$0xff] %vm2491_vm2, %v2172_v37  ;;  %2543 = vst.msk [vmem:[%s3862_s21 + $0x198] sm:$0xff] %vm2491_vm2, %v3253_v38  ;;  %v3381_v39 = vpop.f32.mrb[50].mxu1  ;;  %v1663_v40 = vpop.f32.mrb[51].mxu0 }
 0x149   : > { %2671 = vst.msk [vmem:[%s3862_s21 + $0x598] sm:$0xff] %vm2491_vm2, %v3381_v39  ;;  %2541 = vst.msk [vmem:[%s3862_s21 + $0x188] sm:$0xff] %vm2491_vm2, %v1663_v40  ;;  %v2175_v41 = vpop.f32.mrb[51].mxu1 }
 0x14a   : > { %2669 = vst.msk [vmem:[%s3862_s21 + $0x588] sm:$0xff] %vm2491_vm2, %v2175_v41 }
 0x14d   : > { %v3256_v42 = vpop.f32.mrb[52].mxu0 }
 0x14e   : > { %2546 = vst.msk [vmem:[%s3862_s21 + $0x1b0] sm:$0xff] %vm2491_vm2, %v3256_v42  ;;  %v3384_v43 = vpop.f32.mrb[52].mxu1  ;;  %v1676_v44 = vpop.f32.mrb[53].mxu0 }
 0x14f   : > { %2674 = vst.msk [vmem:[%s3862_s21 + $0x5b0] sm:$0xff] %vm2491_vm2, %v3384_v43  ;;  %2544 = vst.msk [vmem:[%s3862_s21 + $0x1a0] sm:$0xff] %vm2491_vm2, %v1676_v44  ;;  %v2188_v45 = vpop.f32.mrb[53].mxu1  ;;  %v3257_v46 = vpop.f32.mrb[54].mxu0 }
 0x150   : > { %2672 = vst.msk [vmem:[%s3862_s21 + $0x5a0] sm:$0xff] %vm2491_vm2, %v2188_v45  ;;  %2547 = vst.msk [vmem:[%s3862_s21 + $0x1b8] sm:$0xff] %vm2491_vm2, %v3257_v46  ;;  %v3385_v47 = vpop.f32.mrb[54].mxu1  ;;  %v1679_v48 = vpop.f32.mrb[55].mxu0 }
 0x151   : > { %2675 = vst.msk [vmem:[%s3862_s21 + $0x5b8] sm:$0xff] %vm2491_vm2, %v3385_v47  ;;  %2545 = vst.msk [vmem:[%s3862_s21 + $0x1a8] sm:$0xff] %vm2491_vm2, %v1679_v48  ;;  %v2191_v49 = vpop.f32.mrb[55].mxu1 }
 0x152   : > { %2673 = vst.msk [vmem:[%s3862_s21 + $0x5a8] sm:$0xff] %vm2491_vm2, %v2191_v49 }
 0x155   : > { %v3260_v50 = vpop.f32.mrb[56].mxu0 }
 0x156   : > { %2550 = vst.msk [vmem:[%s3862_s21 + $0x1d0] sm:$0xff] %vm2491_vm2, %v3260_v50  ;;  %v3388_v51 = vpop.f32.mrb[56].mxu1  ;;  %v1692_v52 = vpop.f32.mrb[57].mxu0 }
 0x157   : > { %2678 = vst.msk [vmem:[%s3862_s21 + $0x5d0] sm:$0xff] %vm2491_vm2, %v3388_v51  ;;  %2548 = vst.msk [vmem:[%s3862_s21 + $0x1c0] sm:$0xff] %vm2491_vm2, %v1692_v52  ;;  %v2204_v53 = vpop.f32.mrb[57].mxu1  ;;  %v3261_v54 = vpop.f32.mrb[58].mxu0 }
 0x158   : > { %2676 = vst.msk [vmem:[%s3862_s21 + $0x5c0] sm:$0xff] %vm2491_vm2, %v2204_v53  ;;  %2551 = vst.msk [vmem:[%s3862_s21 + $0x1d8] sm:$0xff] %vm2491_vm2, %v3261_v54  ;;  %v3389_v55 = vpop.f32.mrb[58].mxu1  ;;  %v1695_v56 = vpop.f32.mrb[59].mxu0 }
 0x159   : > { %2679 = vst.msk [vmem:[%s3862_s21 + $0x5d8] sm:$0xff] %vm2491_vm2, %v3389_v55  ;;  %2549 = vst.msk [vmem:[%s3862_s21 + $0x1c8] sm:$0xff] %vm2491_vm2, %v1695_v56  ;;  %v2207_v57 = vpop.f32.mrb[59].mxu1 }
 0x15a   : > { %2677 = vst.msk [vmem:[%s3862_s21 + $0x5c8] sm:$0xff] %vm2491_vm2, %v2207_v57 }
 0x15d   : > { %v3264_v58 = vpop.f32.mrb[60].mxu0 }
 0x15e   : > { %2554 = vst.msk [vmem:[%s3862_s21 + $0x1f0] sm:$0xff] %vm2491_vm2, %v3264_v58  ;;  %v3392_v59 = vpop.f32.mrb[60].mxu1  ;;  %v1708_v60 = vpop.f32.mrb[61].mxu0 }
 0x15f   : > { %2682 = vst.msk [vmem:[%s3862_s21 + $0x5f0] sm:$0xff] %vm2491_vm2, %v3392_v59  ;;  %2552 = vst.msk [vmem:[%s3862_s21 + $0x1e0] sm:$0xff] %vm2491_vm2, %v1708_v60  ;;  %v2220_v61 = vpop.f32.mrb[61].mxu1  ;;  %v3265_v62 = vpop.f32.mrb[62].mxu0 }
 0x160   : > { %2680 = vst.msk [vmem:[%s3862_s21 + $0x5e0] sm:$0xff] %vm2491_vm2, %v2220_v61  ;;  %2555 = vst.msk [vmem:[%s3862_s21 + $0x1f8] sm:$0xff] %vm2491_vm2, %v3265_v62  ;;  %v3393_v63 = vpop.f32.mrb[62].mxu1  ;;  %v1711_v0 = vpop.f32.mrb[63].mxu0 }
 0x161   : > { %2683 = vst.msk [vmem:[%s3862_s21 + $0x5f8] sm:$0xff] %vm2491_vm2, %v3393_v63  ;;  %2553 = vst.msk [vmem:[%s3862_s21 + $0x1e8] sm:$0xff] %vm2491_vm2, %v1711_v0  ;;  %v2223_v1 = vpop.f32.mrb[63].mxu1 }
 0x162   : > { %2681 = vst.msk [vmem:[%s3862_s21 + $0x5e8] sm:$0xff] %vm2491_vm2, %v2223_v1 }
 0x165   : > { %v3268_v2 = vpop.f32.mrb[64].mxu0 }
 0x166   : > { %2558 = vst.msk [vmem:[%s3862_s21 + $0x210] sm:$0xff] %vm2491_vm2, %v3268_v2  ;;  %v3396_v3 = vpop.f32.mrb[64].mxu1  ;;  %v1724_v4 = vpop.f32.mrb[65].mxu0 }
 0x167   : > { %2686 = vst.msk [vmem:[%s3862_s21 + $0x610] sm:$0xff] %vm2491_vm2, %v3396_v3  ;;  %2556 = vst.msk [vmem:[%s3862_s21 + $0x200] sm:$0xff] %vm2491_vm2, %v1724_v4  ;;  %v2236_v5 = vpop.f32.mrb[65].mxu1  ;;  %v3269_v6 = vpop.f32.mrb[66].mxu0 }
 0x168   : > { %2684 = vst.msk [vmem:[%s3862_s21 + $0x600] sm:$0xff] %vm2491_vm2, %v2236_v5  ;;  %2559 = vst.msk [vmem:[%s3862_s21 + $0x218] sm:$0xff] %vm2491_vm2, %v3269_v6  ;;  %v3397_v7 = vpop.f32.mrb[66].mxu1  ;;  %v1727_v8 = vpop.f32.mrb[67].mxu0 }
 0x169   : > { %2687 = vst.msk [vmem:[%s3862_s21 + $0x618] sm:$0xff] %vm2491_vm2, %v3397_v7  ;;  %2557 = vst.msk [vmem:[%s3862_s21 + $0x208] sm:$0xff] %vm2491_vm2, %v1727_v8  ;;  %v2239_v9 = vpop.f32.mrb[67].mxu1 }
 0x16a   : > { %2685 = vst.msk [vmem:[%s3862_s21 + $0x608] sm:$0xff] %vm2491_vm2, %v2239_v9 }
 0x16d   : > { %v3272_v10 = vpop.f32.mrb[68].mxu0 }
 0x16e   : > { %2562 = vst.msk [vmem:[%s3862_s21 + $0x230] sm:$0xff] %vm2491_vm2, %v3272_v10  ;;  %v3400_v11 = vpop.f32.mrb[68].mxu1  ;;  %v1740_v12 = vpop.f32.mrb[69].mxu0 }
 0x16f   : > { %2690 = vst.msk [vmem:[%s3862_s21 + $0x630] sm:$0xff] %vm2491_vm2, %v3400_v11  ;;  %2560 = vst.msk [vmem:[%s3862_s21 + $0x220] sm:$0xff] %vm2491_vm2, %v1740_v12  ;;  %v2252_v13 = vpop.f32.mrb[69].mxu1  ;;  %v3273_v14 = vpop.f32.mrb[70].mxu0 }
 0x170   : > { %2688 = vst.msk [vmem:[%s3862_s21 + $0x620] sm:$0xff] %vm2491_vm2, %v2252_v13  ;;  %2563 = vst.msk [vmem:[%s3862_s21 + $0x238] sm:$0xff] %vm2491_vm2, %v3273_v14  ;;  %v3401_v15 = vpop.f32.mrb[70].mxu1  ;;  %v1743_v16 = vpop.f32.mrb[71].mxu0 }
 0x171   : > { %2691 = vst.msk [vmem:[%s3862_s21 + $0x638] sm:$0xff] %vm2491_vm2, %v3401_v15  ;;  %2561 = vst.msk [vmem:[%s3862_s21 + $0x228] sm:$0xff] %vm2491_vm2, %v1743_v16  ;;  %v2255_v17 = vpop.f32.mrb[71].mxu1 }
 0x172   : > { %2689 = vst.msk [vmem:[%s3862_s21 + $0x628] sm:$0xff] %vm2491_vm2, %v2255_v17 }
 0x175   : > { %v3276_v18 = vpop.f32.mrb[72].mxu0 }
 0x176   : > { %2566 = vst.msk [vmem:[%s3862_s21 + $0x250] sm:$0xff] %vm2491_vm2, %v3276_v18  ;;  %v3404_v19 = vpop.f32.mrb[72].mxu1  ;;  %v1756_v20 = vpop.f32.mrb[73].mxu0 }
 0x177   : > { %2694 = vst.msk [vmem:[%s3862_s21 + $0x650] sm:$0xff] %vm2491_vm2, %v3404_v19  ;;  %2564 = vst.msk [vmem:[%s3862_s21 + $0x240] sm:$0xff] %vm2491_vm2, %v1756_v20  ;;  %v2268_v21 = vpop.f32.mrb[73].mxu1  ;;  %v3277_v22 = vpop.f32.mrb[74].mxu0 }
 0x178   : > { %2692 = vst.msk [vmem:[%s3862_s21 + $0x640] sm:$0xff] %vm2491_vm2, %v2268_v21  ;;  %2567 = vst.msk [vmem:[%s3862_s21 + $0x258] sm:$0xff] %vm2491_vm2, %v3277_v22  ;;  %v3405_v23 = vpop.f32.mrb[74].mxu1  ;;  %v1759_v24 = vpop.f32.mrb[75].mxu0 }
 0x179   : > { %2695 = vst.msk [vmem:[%s3862_s21 + $0x658] sm:$0xff] %vm2491_vm2, %v3405_v23  ;;  %2565 = vst.msk [vmem:[%s3862_s21 + $0x248] sm:$0xff] %vm2491_vm2, %v1759_v24  ;;  %v2271_v25 = vpop.f32.mrb[75].mxu1 }
 0x17a   : > { %2693 = vst.msk [vmem:[%s3862_s21 + $0x648] sm:$0xff] %vm2491_vm2, %v2271_v25 }
 0x17d   : > { %v3280_v26 = vpop.f32.mrb[76].mxu0 }
 0x17e   : > { %2570 = vst.msk [vmem:[%s3862_s21 + $0x270] sm:$0xff] %vm2491_vm2, %v3280_v26  ;;  %v3408_v27 = vpop.f32.mrb[76].mxu1  ;;  %v1772_v28 = vpop.f32.mrb[77].mxu0 }
 0x17f   : > { %2698 = vst.msk [vmem:[%s3862_s21 + $0x670] sm:$0xff] %vm2491_vm2, %v3408_v27  ;;  %2568 = vst.msk [vmem:[%s3862_s21 + $0x260] sm:$0xff] %vm2491_vm2, %v1772_v28  ;;  %v2284_v29 = vpop.f32.mrb[77].mxu1  ;;  %v3281_v30 = vpop.f32.mrb[78].mxu0 }
 0x180   : > { %2696 = vst.msk [vmem:[%s3862_s21 + $0x660] sm:$0xff] %vm2491_vm2, %v2284_v29  ;;  %2571 = vst.msk [vmem:[%s3862_s21 + $0x278] sm:$0xff] %vm2491_vm2, %v3281_v30  ;;  %v3409_v31 = vpop.f32.mrb[78].mxu1  ;;  %v1775_v32 = vpop.f32.mrb[79].mxu0 }
 0x181   : > { %2699 = vst.msk [vmem:[%s3862_s21 + $0x678] sm:$0xff] %vm2491_vm2, %v3409_v31  ;;  %2569 = vst.msk [vmem:[%s3862_s21 + $0x268] sm:$0xff] %vm2491_vm2, %v1775_v32  ;;  %v2287_v33 = vpop.f32.mrb[79].mxu1 }
 0x182   : > { %2697 = vst.msk [vmem:[%s3862_s21 + $0x668] sm:$0xff] %vm2491_vm2, %v2287_v33 }
 0x185   : > { %v3284_v34 = vpop.f32.mrb[80].mxu0 }
 0x186   : > { %2574 = vst.msk [vmem:[%s3862_s21 + $0x290] sm:$0xff] %vm2491_vm2, %v3284_v34  ;;  %v3412_v35 = vpop.f32.mrb[80].mxu1  ;;  %v1788_v36 = vpop.f32.mrb[81].mxu0 }
 0x187   : > { %2702 = vst.msk [vmem:[%s3862_s21 + $0x690] sm:$0xff] %vm2491_vm2, %v3412_v35  ;;  %2572 = vst.msk [vmem:[%s3862_s21 + $0x280] sm:$0xff] %vm2491_vm2, %v1788_v36  ;;  %v2300_v37 = vpop.f32.mrb[81].mxu1  ;;  %v3285_v38 = vpop.f32.mrb[82].mxu0 }
 0x188   : > { %2700 = vst.msk [vmem:[%s3862_s21 + $0x680] sm:$0xff] %vm2491_vm2, %v2300_v37  ;;  %2575 = vst.msk [vmem:[%s3862_s21 + $0x298] sm:$0xff] %vm2491_vm2, %v3285_v38  ;;  %v3413_v39 = vpop.f32.mrb[82].mxu1  ;;  %v1791_v40 = vpop.f32.mrb[83].mxu0 }
 0x189   : > { %2703 = vst.msk [vmem:[%s3862_s21 + $0x698] sm:$0xff] %vm2491_vm2, %v3413_v39  ;;  %2573 = vst.msk [vmem:[%s3862_s21 + $0x288] sm:$0xff] %vm2491_vm2, %v1791_v40  ;;  %v2303_v41 = vpop.f32.mrb[83].mxu1 }
 0x18a   : > { %2701 = vst.msk [vmem:[%s3862_s21 + $0x688] sm:$0xff] %vm2491_vm2, %v2303_v41 }
 0x18d   : > { %v3288_v42 = vpop.f32.mrb[84].mxu0 }
 0x18e   : > { %2578 = vst.msk [vmem:[%s3862_s21 + $0x2b0] sm:$0xff] %vm2491_vm2, %v3288_v42  ;;  %v3416_v43 = vpop.f32.mrb[84].mxu1  ;;  %v1804_v44 = vpop.f32.mrb[85].mxu0 }
 0x18f   : > { %2706 = vst.msk [vmem:[%s3862_s21 + $0x6b0] sm:$0xff] %vm2491_vm2, %v3416_v43  ;;  %2576 = vst.msk [vmem:[%s3862_s21 + $0x2a0] sm:$0xff] %vm2491_vm2, %v1804_v44  ;;  %v2316_v45 = vpop.f32.mrb[85].mxu1  ;;  %v3289_v46 = vpop.f32.mrb[86].mxu0 }
 0x190   : > { %2704 = vst.msk [vmem:[%s3862_s21 + $0x6a0] sm:$0xff] %vm2491_vm2, %v2316_v45  ;;  %2579 = vst.msk [vmem:[%s3862_s21 + $0x2b8] sm:$0xff] %vm2491_vm2, %v3289_v46  ;;  %v3417_v47 = vpop.f32.mrb[86].mxu1  ;;  %v1807_v48 = vpop.f32.mrb[87].mxu0 }
 0x191   : > { %2707 = vst.msk [vmem:[%s3862_s21 + $0x6b8] sm:$0xff] %vm2491_vm2, %v3417_v47  ;;  %2577 = vst.msk [vmem:[%s3862_s21 + $0x2a8] sm:$0xff] %vm2491_vm2, %v1807_v48  ;;  %v2319_v49 = vpop.f32.mrb[87].mxu1 }
 0x192   : > { %2705 = vst.msk [vmem:[%s3862_s21 + $0x6a8] sm:$0xff] %vm2491_vm2, %v2319_v49 }
 0x195   : > { %v3292_v50 = vpop.f32.mrb[88].mxu0 }
 0x196   : > { %2582 = vst.msk [vmem:[%s3862_s21 + $0x2d0] sm:$0xff] %vm2491_vm2, %v3292_v50  ;;  %v3420_v51 = vpop.f32.mrb[88].mxu1  ;;  %v1820_v52 = vpop.f32.mrb[89].mxu0 }
 0x197   : > { %2710 = vst.msk [vmem:[%s3862_s21 + $0x6d0] sm:$0xff] %vm2491_vm2, %v3420_v51  ;;  %2580 = vst.msk [vmem:[%s3862_s21 + $0x2c0] sm:$0xff] %vm2491_vm2, %v1820_v52  ;;  %v2332_v53 = vpop.f32.mrb[89].mxu1  ;;  %v3293_v54 = vpop.f32.mrb[90].mxu0 }
 0x198   : > { %2708 = vst.msk [vmem:[%s3862_s21 + $0x6c0] sm:$0xff] %vm2491_vm2, %v2332_v53  ;;  %2583 = vst.msk [vmem:[%s3862_s21 + $0x2d8] sm:$0xff] %vm2491_vm2, %v3293_v54  ;;  %v3421_v55 = vpop.f32.mrb[90].mxu1  ;;  %v1823_v56 = vpop.f32.mrb[91].mxu0 }
 0x199   : > { %2711 = vst.msk [vmem:[%s3862_s21 + $0x6d8] sm:$0xff] %vm2491_vm2, %v3421_v55  ;;  %2581 = vst.msk [vmem:[%s3862_s21 + $0x2c8] sm:$0xff] %vm2491_vm2, %v1823_v56  ;;  %v2335_v57 = vpop.f32.mrb[91].mxu1 }
 0x19a   : > { %2709 = vst.msk [vmem:[%s3862_s21 + $0x6c8] sm:$0xff] %vm2491_vm2, %v2335_v57 }
 0x19d   : > { %v3296_v58 = vpop.f32.mrb[92].mxu0 }
 0x19e   : > { %2586 = vst.msk [vmem:[%s3862_s21 + $0x2f0] sm:$0xff] %vm2491_vm2, %v3296_v58  ;;  %v3424_v59 = vpop.f32.mrb[92].mxu1  ;;  %v1836_v60 = vpop.f32.mrb[93].mxu0 }
 0x19f   : > { %2714 = vst.msk [vmem:[%s3862_s21 + $0x6f0] sm:$0xff] %vm2491_vm2, %v3424_v59  ;;  %2584 = vst.msk [vmem:[%s3862_s21 + $0x2e0] sm:$0xff] %vm2491_vm2, %v1836_v60  ;;  %v2348_v61 = vpop.f32.mrb[93].mxu1  ;;  %v3297_v62 = vpop.f32.mrb[94].mxu0 }
 0x1a0   : > { %2712 = vst.msk [vmem:[%s3862_s21 + $0x6e0] sm:$0xff] %vm2491_vm2, %v2348_v61  ;;  %2587 = vst.msk [vmem:[%s3862_s21 + $0x2f8] sm:$0xff] %vm2491_vm2, %v3297_v62  ;;  %v3425_v63 = vpop.f32.mrb[94].mxu1  ;;  %v1839_v0 = vpop.f32.mrb[95].mxu0 }
 0x1a1   : > { %2715 = vst.msk [vmem:[%s3862_s21 + $0x6f8] sm:$0xff] %vm2491_vm2, %v3425_v63  ;;  %2585 = vst.msk [vmem:[%s3862_s21 + $0x2e8] sm:$0xff] %vm2491_vm2, %v1839_v0  ;;  %v2351_v1 = vpop.f32.mrb[95].mxu1 }
 0x1a2   : > { %2713 = vst.msk [vmem:[%s3862_s21 + $0x6e8] sm:$0xff] %vm2491_vm2, %v2351_v1 }
 0x1a5   : > { %v3300_v2 = vpop.f32.mrb[96].mxu0 }
 0x1a6   : > { %2590 = vst.msk [vmem:[%s3862_s21 + $0x310] sm:$0xff] %vm2491_vm2, %v3300_v2  ;;  %v3428_v3 = vpop.f32.mrb[96].mxu1  ;;  %v1852_v4 = vpop.f32.mrb[97].mxu0 }
 0x1a7   : > { %2718 = vst.msk [vmem:[%s3862_s21 + $0x710] sm:$0xff] %vm2491_vm2, %v3428_v3  ;;  %2588 = vst.msk [vmem:[%s3862_s21 + $0x300] sm:$0xff] %vm2491_vm2, %v1852_v4  ;;  %v2364_v5 = vpop.f32.mrb[97].mxu1  ;;  %v3301_v6 = vpop.f32.mrb[98].mxu0 }
 0x1a8   : > { %2716 = vst.msk [vmem:[%s3862_s21 + $0x700] sm:$0xff] %vm2491_vm2, %v2364_v5  ;;  %2591 = vst.msk [vmem:[%s3862_s21 + $0x318] sm:$0xff] %vm2491_vm2, %v3301_v6  ;;  %v3429_v7 = vpop.f32.mrb[98].mxu1  ;;  %v1855_v8 = vpop.f32.mrb[99].mxu0 }
 0x1a9   : > { %2719 = vst.msk [vmem:[%s3862_s21 + $0x718] sm:$0xff] %vm2491_vm2, %v3429_v7  ;;  %2589 = vst.msk [vmem:[%s3862_s21 + $0x308] sm:$0xff] %vm2491_vm2, %v1855_v8  ;;  %v2367_v9 = vpop.f32.mrb[99].mxu1 }
 0x1aa   : > { %2717 = vst.msk [vmem:[%s3862_s21 + $0x708] sm:$0xff] %vm2491_vm2, %v2367_v9 }
 0x1ad   : > { %v3304_v10 = vpop.f32.mrb[100].mxu0 }
 0x1ae   : > { %2594 = vst.msk [vmem:[%s3862_s21 + $0x330] sm:$0xff] %vm2491_vm2, %v3304_v10  ;;  %v3432_v11 = vpop.f32.mrb[100].mxu1  ;;  %v1868_v12 = vpop.f32.mrb[101].mxu0 }
 0x1af   : > { %2722 = vst.msk [vmem:[%s3862_s21 + $0x730] sm:$0xff] %vm2491_vm2, %v3432_v11  ;;  %2592 = vst.msk [vmem:[%s3862_s21 + $0x320] sm:$0xff] %vm2491_vm2, %v1868_v12  ;;  %v2380_v13 = vpop.f32.mrb[101].mxu1  ;;  %v3305_v14 = vpop.f32.mrb[102].mxu0 }
 0x1b0   : > { %2720 = vst.msk [vmem:[%s3862_s21 + $0x720] sm:$0xff] %vm2491_vm2, %v2380_v13  ;;  %2595 = vst.msk [vmem:[%s3862_s21 + $0x338] sm:$0xff] %vm2491_vm2, %v3305_v14  ;;  %v3433_v15 = vpop.f32.mrb[102].mxu1  ;;  %v1871_v16 = vpop.f32.mrb[103].mxu0 }
 0x1b1   : > { %2723 = vst.msk [vmem:[%s3862_s21 + $0x738] sm:$0xff] %vm2491_vm2, %v3433_v15  ;;  %2593 = vst.msk [vmem:[%s3862_s21 + $0x328] sm:$0xff] %vm2491_vm2, %v1871_v16  ;;  %v2383_v17 = vpop.f32.mrb[103].mxu1 }
 0x1b2   : > { %2721 = vst.msk [vmem:[%s3862_s21 + $0x728] sm:$0xff] %vm2491_vm2, %v2383_v17 }
 0x1b5   : > { %v3308_v18 = vpop.f32.mrb[104].mxu0 }
 0x1b6   : > { %2598 = vst.msk [vmem:[%s3862_s21 + $0x350] sm:$0xff] %vm2491_vm2, %v3308_v18  ;;  %v3436_v19 = vpop.f32.mrb[104].mxu1  ;;  %v1884_v20 = vpop.f32.mrb[105].mxu0 }
 0x1b7   : > { %2726 = vst.msk [vmem:[%s3862_s21 + $0x750] sm:$0xff] %vm2491_vm2, %v3436_v19  ;;  %2596 = vst.msk [vmem:[%s3862_s21 + $0x340] sm:$0xff] %vm2491_vm2, %v1884_v20  ;;  %v2396_v21 = vpop.f32.mrb[105].mxu1  ;;  %v3309_v22 = vpop.f32.mrb[106].mxu0 }
 0x1b8   : > { %2724 = vst.msk [vmem:[%s3862_s21 + $0x740] sm:$0xff] %vm2491_vm2, %v2396_v21  ;;  %2599 = vst.msk [vmem:[%s3862_s21 + $0x358] sm:$0xff] %vm2491_vm2, %v3309_v22  ;;  %v3437_v23 = vpop.f32.mrb[106].mxu1  ;;  %v1887_v24 = vpop.f32.mrb[107].mxu0 }
 0x1b9   : > { %2727 = vst.msk [vmem:[%s3862_s21 + $0x758] sm:$0xff] %vm2491_vm2, %v3437_v23  ;;  %2597 = vst.msk [vmem:[%s3862_s21 + $0x348] sm:$0xff] %vm2491_vm2, %v1887_v24  ;;  %v2399_v25 = vpop.f32.mrb[107].mxu1 }
 0x1ba   : > { %2725 = vst.msk [vmem:[%s3862_s21 + $0x748] sm:$0xff] %vm2491_vm2, %v2399_v25 }
 0x1bd   : > { %v3312_v26 = vpop.f32.mrb[108].mxu0 }
 0x1be   : > { %2602 = vst.msk [vmem:[%s3862_s21 + $0x370] sm:$0xff] %vm2491_vm2, %v3312_v26  ;;  %v3440_v27 = vpop.f32.mrb[108].mxu1  ;;  %v1900_v28 = vpop.f32.mrb[109].mxu0 }
 0x1bf   : > { %2730 = vst.msk [vmem:[%s3862_s21 + $0x770] sm:$0xff] %vm2491_vm2, %v3440_v27  ;;  %2600 = vst.msk [vmem:[%s3862_s21 + $0x360] sm:$0xff] %vm2491_vm2, %v1900_v28  ;;  %v2412_v29 = vpop.f32.mrb[109].mxu1  ;;  %v3313_v30 = vpop.f32.mrb[110].mxu0 }
 0x1c0   : > { %2728 = vst.msk [vmem:[%s3862_s21 + $0x760] sm:$0xff] %vm2491_vm2, %v2412_v29  ;;  %2603 = vst.msk [vmem:[%s3862_s21 + $0x378] sm:$0xff] %vm2491_vm2, %v3313_v30  ;;  %v3441_v31 = vpop.f32.mrb[110].mxu1  ;;  %v1903_v32 = vpop.f32.mrb[111].mxu0 }
 0x1c1   : > { %2731 = vst.msk [vmem:[%s3862_s21 + $0x778] sm:$0xff] %vm2491_vm2, %v3441_v31  ;;  %2601 = vst.msk [vmem:[%s3862_s21 + $0x368] sm:$0xff] %vm2491_vm2, %v1903_v32  ;;  %v2415_v33 = vpop.f32.mrb[111].mxu1 }
 0x1c2   : > { %2729 = vst.msk [vmem:[%s3862_s21 + $0x768] sm:$0xff] %vm2491_vm2, %v2415_v33 }
 0x1c5   : > { %v3316_v34 = vpop.f32.mrb[112].mxu0 }
 0x1c6   : > { %2606 = vst.msk [vmem:[%s3862_s21 + $0x390] sm:$0xff] %vm2491_vm2, %v3316_v34  ;;  %v3444_v35 = vpop.f32.mrb[112].mxu1  ;;  %v1916_v36 = vpop.f32.mrb[113].mxu0 }
 0x1c7   : > { %2734 = vst.msk [vmem:[%s3862_s21 + $0x790] sm:$0xff] %vm2491_vm2, %v3444_v35  ;;  %2604 = vst.msk [vmem:[%s3862_s21 + $0x380] sm:$0xff] %vm2491_vm2, %v1916_v36  ;;  %v2428_v37 = vpop.f32.mrb[113].mxu1  ;;  %v3317_v38 = vpop.f32.mrb[114].mxu0 }
 0x1c8   : > { %2732 = vst.msk [vmem:[%s3862_s21 + $0x780] sm:$0xff] %vm2491_vm2, %v2428_v37  ;;  %2607 = vst.msk [vmem:[%s3862_s21 + $0x398] sm:$0xff] %vm2491_vm2, %v3317_v38  ;;  %v3445_v39 = vpop.f32.mrb[114].mxu1  ;;  %v1919_v40 = vpop.f32.mrb[115].mxu0 }
 0x1c9   : > { %2735 = vst.msk [vmem:[%s3862_s21 + $0x798] sm:$0xff] %vm2491_vm2, %v3445_v39  ;;  %2605 = vst.msk [vmem:[%s3862_s21 + $0x388] sm:$0xff] %vm2491_vm2, %v1919_v40  ;;  %v2431_v41 = vpop.f32.mrb[115].mxu1 }
 0x1ca   : > { %2733 = vst.msk [vmem:[%s3862_s21 + $0x788] sm:$0xff] %vm2491_vm2, %v2431_v41 }
 0x1cd   : > { %v3320_v42 = vpop.f32.mrb[116].mxu0 }
 0x1ce   : > { %2610 = vst.msk [vmem:[%s3862_s21 + $0x3b0] sm:$0xff] %vm2491_vm2, %v3320_v42  ;;  %v3448_v43 = vpop.f32.mrb[116].mxu1  ;;  %v1932_v44 = vpop.f32.mrb[117].mxu0 }
 0x1cf   : > { %2738 = vst.msk [vmem:[%s3862_s21 + $0x7b0] sm:$0xff] %vm2491_vm2, %v3448_v43  ;;  %2608 = vst.msk [vmem:[%s3862_s21 + $0x3a0] sm:$0xff] %vm2491_vm2, %v1932_v44  ;;  %v2444_v45 = vpop.f32.mrb[117].mxu1  ;;  %v3321_v46 = vpop.f32.mrb[118].mxu0 }
 0x1d0   : > { %2736 = vst.msk [vmem:[%s3862_s21 + $0x7a0] sm:$0xff] %vm2491_vm2, %v2444_v45  ;;  %2611 = vst.msk [vmem:[%s3862_s21 + $0x3b8] sm:$0xff] %vm2491_vm2, %v3321_v46  ;;  %v3449_v47 = vpop.f32.mrb[118].mxu1  ;;  %v1935_v48 = vpop.f32.mrb[119].mxu0 }
 0x1d1   : > { %2739 = vst.msk [vmem:[%s3862_s21 + $0x7b8] sm:$0xff] %vm2491_vm2, %v3449_v47  ;;  %2609 = vst.msk [vmem:[%s3862_s21 + $0x3a8] sm:$0xff] %vm2491_vm2, %v1935_v48  ;;  %v2447_v49 = vpop.f32.mrb[119].mxu1 }
 0x1d2   : > { %2737 = vst.msk [vmem:[%s3862_s21 + $0x7a8] sm:$0xff] %vm2491_vm2, %v2447_v49 }
 0x1d5   : > { %v3324_v50 = vpop.f32.mrb[120].mxu0 }
 0x1d6   : > { %2614 = vst.msk [vmem:[%s3862_s21 + $0x3d0] sm:$0xff] %vm2491_vm2, %v3324_v50  ;;  %v3452_v51 = vpop.f32.mrb[120].mxu1  ;;  %v1948_v52 = vpop.f32.mrb[121].mxu0 }
 0x1d7   : > { %2742 = vst.msk [vmem:[%s3862_s21 + $0x7d0] sm:$0xff] %vm2491_vm2, %v3452_v51  ;;  %2612 = vst.msk [vmem:[%s3862_s21 + $0x3c0] sm:$0xff] %vm2491_vm2, %v1948_v52  ;;  %v2460_v53 = vpop.f32.mrb[121].mxu1  ;;  %v3325_v54 = vpop.f32.mrb[122].mxu0 }
 0x1d8   : > { %2740 = vst.msk [vmem:[%s3862_s21 + $0x7c0] sm:$0xff] %vm2491_vm2, %v2460_v53  ;;  %2615 = vst.msk [vmem:[%s3862_s21 + $0x3d8] sm:$0xff] %vm2491_vm2, %v3325_v54  ;;  %v3453_v55 = vpop.f32.mrb[122].mxu1  ;;  %v1951_v56 = vpop.f32.mrb[123].mxu0 }
 0x1d9   : > { %2743 = vst.msk [vmem:[%s3862_s21 + $0x7d8] sm:$0xff] %vm2491_vm2, %v3453_v55  ;;  %2613 = vst.msk [vmem:[%s3862_s21 + $0x3c8] sm:$0xff] %vm2491_vm2, %v1951_v56  ;;  %v2463_v57 = vpop.f32.mrb[123].mxu1 }
 0x1da   : > { %2741 = vst.msk [vmem:[%s3862_s21 + $0x7c8] sm:$0xff] %vm2491_vm2, %v2463_v57 }
 0x1dd   : > { %v3328_v58 = vpop.f32.mrb[124].mxu0 }
 0x1de   : > { %2618 = vst.msk [vmem:[%s3862_s21 + $0x3f0] sm:$0xff] %vm2491_vm2, %v3328_v58  ;;  %v3456_v59 = vpop.f32.mrb[124].mxu1  ;;  %v1964_v60 = vpop.f32.mrb[125].mxu0 }
 0x1df   : > { %2746 = vst.msk [vmem:[%s3862_s21 + $0x7f0] sm:$0xff] %vm2491_vm2, %v3456_v59  ;;  %2616 = vst.msk [vmem:[%s3862_s21 + $0x3e0] sm:$0xff] %vm2491_vm2, %v1964_v60  ;;  %v2476_v61 = vpop.f32.mrb[125].mxu1  ;;  %v3329_v62 = vpop.f32.mrb[126].mxu0 }
 0x1e0   : > { %2744 = vst.msk [vmem:[%s3862_s21 + $0x7e0] sm:$0xff] %vm2491_vm2, %v2476_v61  ;;  %2619 = vst.msk [vmem:[%s3862_s21 + $0x3f8] sm:$0xff] %vm2491_vm2, %v3329_v62  ;;  %v3457_v63 = vpop.f32.mrb[126].mxu1  ;;  %v1967_v0 = vpop.f32.mrb[127].mxu0 }
 0x1e1   : > { %2747 = vst.msk [vmem:[%s3862_s21 + $0x7f8] sm:$0xff] %vm2491_vm2, %v3457_v63  ;;  %2617 = vst.msk [vmem:[%s3862_s21 + $0x3e8] sm:$0xff] %vm2491_vm2, %v1967_v0  ;;  %v2479_v1 = vpop.f32.mrb[127].mxu1 }
 0x1e2   : > { %2745 = vst.msk [vmem:[%s3862_s21 + $0x7e8] sm:$0xff] %vm2491_vm2, %v2479_v1 }
 0x1e3 PF: > { %s12_s9 = sadd.s32 1, %s3604_s9  }
 0x1e4   : > { %p9_p4 = scmp.ge.s32.totalorder %s12_s9, 4  }
 0x1e6   :  { %11 = sbr.rel (!%p9_p4) target bundleno = 1 (0x1), region = 58 }

</bundles_post_ra>
